<compile_context>
chip_gen: v7x
topology: tpu7x:2x2x1
jax: 0.10.0
libtpu: 0.0.40
codegen_flags: <defaults>
</compile_context>

<pallas_src>
import functools

import jax
import jax.numpy as jnp
from jax.experimental import pallas as pl
from jax.experimental.pallas import tpu as pltpu


def _sdpa_kernel(q_ref, k_ref, v_ref, o_ref, *, scale_factor):
    """SDPA without dropout.  q: (G,Sq,D), k/v: (G,Sk,D), o: (G,Sq,D)."""
    q = q_ref[...]
    if scale_factor != 1.0:
        q = q * scale_factor                    # fold scale into q (Sq*D elems)
    k = k_ref[...]
    v = v_ref[...]

    # Q @ K^T without an explicit transpose: contract the last (D) dims.
    s = jnp.einsum("gqd,gkd->gqk", q, k,
                   preferred_element_type=jnp.float32)      # (G, Sq, Sk) f32

    mx = jnp.max(s, axis=-1, keepdims=True)
    e = jnp.exp(s - mx)
    inv = pl.reciprocal(jnp.sum(e, axis=-1, keepdims=True), approx=True)
    p = e * inv                                              # softmax probs

    # attn @ V — cast probs to value dtype so bf16 inputs take the bf16 MXU path.
    o_ref[...] = jnp.einsum("gqk,gkd->gqd", p.astype(v.dtype), v,
                            preferred_element_type=jnp.float32).astype(o_ref.dtype)


def _sdpa_dropout_kernel(q_ref, k_ref, v_ref, mask_ref, o_ref, *,
                         scale_factor, keep_scale):
    """SDPA with training-mode dropout.  mask: int8 {0,1}, keep-scale folded
    into the softmax reciprocal."""
    q = q_ref[...]
    if scale_factor != 1.0:
        q = q * scale_factor
    k = k_ref[...]
    v = v_ref[...]

    s = jnp.einsum("gqd,gkd->gqk", q, k,
                   preferred_element_type=jnp.float32)      # (G, Sq, Sk) f32

    mx = jnp.max(s, axis=-1, keepdims=True)
    e = jnp.exp(s - mx)
    # 1/(sum) * 1/(1-p) in one EUP reciprocal + one tiny (G,Sq,1) multiply.
    inv = pl.reciprocal(jnp.sum(e, axis=-1, keepdims=True), approx=True) * keep_scale
    p = (e * inv) * mask_ref[...].astype(jnp.float32)        # dropout

    o_ref[...] = jnp.einsum("gqk,gkd->gqd", p.astype(v.dtype), v,
                            preferred_element_type=jnp.float32).astype(o_ref.dtype)


def _num_tensorcores():
    """Best-effort TensorCores-per-chip (v7x has 2, v5e/v6e have 1)."""
    try:
        kind = jax.devices()[0].device_kind.lower()
    except Exception:
        return 1
    return 2 if "v7" in kind else 1


def sdpa_pallas(q, k, v, scale_factor=1.0, dropout_p=0.2, rng_key=None):
    B, H, Sq, D = q.shape
    Sk = k.shape[2]
    assert k.shape == (B, H, Sk, D)
    assert v.shape[-1] == D
    BH = B * H

    dropout_p = float(dropout_p)
    if dropout_p >= 1.0:
        # F.dropout with p >= 1 zeroes everything (avoid 1/(1-p) blow-up).
        return jnp.zeros((B, H, Sq, D), dtype=q.dtype)

    qf = q.reshape(BH, Sq, D)
    kf = k.reshape(BH, Sk, D)
    vf = v.reshape(BH, Sk, D)

    # One grid step per TensorCore: 1 on v5e/v6e, 2 on v7x (if BH divides).
    n_cores = _num_tensorcores()
    n_steps = n_cores if (n_cores > 1 and BH % n_cores == 0) else 1
    G = BH // n_steps
    grid = (n_steps,)

    q_spec = pl.BlockSpec((G, Sq, D), lambda i: (i, 0, 0))
    k_spec = pl.BlockSpec((G, Sk, D), lambda i: (i, 0, 0))
    v_spec = pl.BlockSpec((G, Sk, D), lambda i: (i, 0, 0))
    o_spec = pl.BlockSpec((G, Sq, D), lambda i: (i, 0, 0))
    out_shape = jax.ShapeDtypeStruct((BH, Sq, D), q.dtype)
    cparams = pltpu.CompilerParams(dimension_semantics=("parallel",))

    itemsize = jnp.dtype(q.dtype).itemsize
    base_bytes = (qf.size + kf.size + vf.size + BH * Sq * D) * itemsize
    flops = 4 * BH * Sq * Sk * D          # QK^T + PV matmuls
    transc = BH * Sq * Sk                 # exp

    if dropout_p > 0.0:
        if rng_key is None:
            # TODO(synk): callers should pass a fresh key for real training;
            # a fixed default makes the dropout mask identical across calls.
            rng_key = jax.random.PRNGKey(0)
        keep = jax.random.bernoulli(
            rng_key, 1.0 - dropout_p, (BH, Sq, Sk)).astype(jnp.int8)
        kernel = functools.partial(
            _sdpa_dropout_kernel,
            scale_factor=float(scale_factor),
            keep_scale=1.0 / (1.0 - dropout_p))
        cost = pl.CostEstimate(flops=flops, transcendentals=transc,
                               bytes_accessed=base_bytes + keep.size)
        out = pl.pallas_call(
            kernel,
            out_shape=out_shape,
            grid=grid,
            in_specs=[q_spec, k_spec, v_spec,
                      pl.BlockSpec((G, Sq, Sk), lambda i: (i, 0, 0))],
            out_specs=o_spec,
            compiler_params=cparams,
            cost_estimate=cost,
        )(qf, kf, vf, keep)
    else:
        kernel = functools.partial(_sdpa_kernel, scale_factor=float(scale_factor))
        cost = pl.CostEstimate(flops=flops, transcendentals=transc,
                               bytes_accessed=base_bytes)
        out = pl.pallas_call(
            kernel,
            out_shape=out_shape,
            grid=grid,
            in_specs=[q_spec, k_spec, v_spec],
            out_specs=o_spec,
            compiler_params=cparams,
            cost_estimate=cost,
        )(qf, kf, vf)

    return out.reshape(B, H, Sq, D)


class Model:
    """JAX/Pallas port of the PyTorch Model (AttentionCore = sfdp=2 pattern).

    query_channels / key_channels / n_units / n_heads / dropout are accepted
    for signature parity; the sfdp=2 attention core has no learned parameters.
    Dropout is training-mode (as in the PyTorch F.dropout default); pass
    dropout_p=0 for inference.
    """

    def __init__(self, query_channels, key_channels, n_units, n_heads, dropout):
        self.query_channels = query_channels
        self.key_channels = key_channels
        self.n_units = n_units
        self.n_heads = n_heads
        self.dropout = dropout

    def __call__(self, query, key, value, scale_factor=1, dropout_p=0.2,
                 rng_key=None):
        return sdpa_pallas(query, key, value, scale_factor, dropout_p, rng_key)


if __name__ == "__main__":
    # Shapes consistent with the module's tensors (B, H, L, D) = (1, 32, 5, 32)
    # for query, key seq-len 4; value seq-len matched to key's so attn @ value
    # is well-formed.
    # TODO(synk): the original module's value has seq-len 5 (incompatible with
    # attn @ value); we intentionally use key's seq-len here.
    B, H, Sq, Sk, D = 1, 32, 5, 4, 32

    key0 = jax.random.PRNGKey(0)
    kq, kk, kv, kd = jax.random.split(key0, 4)
    query = jax.random.normal(kq, (B, H, Sq, D), dtype=jnp.float32)
    key_t = jax.random.normal(kk, (B, H, Sk, D), dtype=jnp.float32)
    value = jax.random.normal(kv, (B, H, Sk, D), dtype=jnp.float32)

    model = Model(query_channels=1, key_channels=1, n_units=1, n_heads=1, dropout=1)

    # Deterministic (no-dropout) path: exercises the maskless kernel and is
    # checked against a pure-JAX reference (loose tol: approx reciprocal).
    out_eval = model(query, key_t, value, scale_factor=1, dropout_p=0.0)
    jax.block_until_ready(out_eval)
    s_ref = jnp.einsum("bhqd,bhkd->bhqk", query, key_t)
    ref = jnp.einsum("bhqk,bhkd->bhqd", jax.nn.softmax(s_ref, axis=-1), value)
    assert out_eval.shape == (B, H, Sq, D)
    assert jnp.all(jnp.isfinite(out_eval))
    assert jnp.allclose(out_eval, ref, atol=5e-2, rtol=5e-2)

    # Training-mode dropout path (exercises the int8-masked kernel variant).
    out_train = model(query, key_t, value, scale_factor=1, dropout_p=0.2,
                      rng_key=kd)
    jax.block_until_ready(out_train)
    assert out_train.shape == (B, H, Sq, D)
    assert jnp.all(jnp.isfinite(out_train))

    print("KERNEL_OK")
</pallas_src>

<mosaic_0001>
module attributes {stable_mosaic.version = 11 : i64} {
  func.func @_sdpa_kernel(%arg0: i32, %arg1: memref<32x5x32xf32, #tpu.memory_space<vmem>>, %arg2: memref<32x4x32xf32, #tpu.memory_space<vmem>>, %arg3: memref<32x4x32xf32, #tpu.memory_space<vmem>>, %arg4: memref<32x5x32xf32, #tpu.memory_space<vmem>>) attributes {dimension_semantics = [#tpu.dimension_semantics<parallel>], iteration_bounds = array<i64: 1>, scalar_prefetch = 0 : i64, scratch_operands = 0 : i64, tpu.core_type = #tpu.core_type<tc>, window_params = [{transform_indices = @transform_0, window_bounds = array<i64: 32, 5, 32>}, {transform_indices = @transform_1, window_bounds = array<i64: 32, 4, 32>}, {transform_indices = @transform_2, window_bounds = array<i64: 32, 4, 32>}, {transform_indices = @transform_3, window_bounds = array<i64: 32, 5, 32>}]} {
    %c0 = arith.constant 0 : index
    %c0_0 = arith.constant 0 : index
    %c0_1 = arith.constant 0 : index
    %0 = vector.load %arg1[%c0, %c0_0, %c0_1] : memref<32x5x32xf32, #tpu.memory_space<vmem>>, vector<32x5x32xf32>
    %c0_2 = arith.constant 0 : index
    %c0_3 = arith.constant 0 : index
    %c0_4 = arith.constant 0 : index
    %1 = vector.load %arg2[%c0_2, %c0_3, %c0_4] : memref<32x4x32xf32, #tpu.memory_space<vmem>>, vector<32x4x32xf32>
    %c0_5 = arith.constant 0 : index
    %c0_6 = arith.constant 0 : index
    %c0_7 = arith.constant 0 : index
    %2 = vector.load %arg3[%c0_5, %c0_6, %c0_7] : memref<32x4x32xf32, #tpu.memory_space<vmem>>, vector<32x4x32xf32>
    "tpu.trace_start"() <{level = 10 : i32, message = "gqd,gkd->gqk"}> : () -> ()
    %cst = arith.constant dense<0.000000e+00> : vector<32x5x4xf32>
    %3 = tpu.matmul %0, %1, %cst {dimension_numbers = #tpu.dot_dimension_numbers<[2], [2], [1], [1], [0, 0, 0, 1, 1, 1], [0], [0]>} : vector<32x5x32xf32>, vector<32x4x32xf32>, vector<32x5x4xf32> -> vector<32x5x4xf32>
    "tpu.trace_stop"() : () -> ()
    %cst_8 = arith.constant dense<0xFF800000> : vector<32x5xf32>
    %4 = vector.multi_reduction <maximumf>, %3, %cst_8 [2] : vector<32x5x4xf32> to vector<32x5xf32>
    %5 = vector.shape_cast %4 : vector<32x5xf32> to vector<32x5x1xf32>
    %6 = vector.broadcast %5 : vector<32x5x1xf32> to vector<32x5x4xf32>
    %7 = arith.subf %3, %6 : vector<32x5x4xf32>
    %8 = math.exp %7 : vector<32x5x4xf32>
    %cst_9 = arith.constant dense<0.000000e+00> : vector<32x5xf32>
    %9 = vector.multi_reduction <add>, %8, %cst_9 [2] : vector<32x5x4xf32> to vector<32x5xf32>
    %10 = vector.shape_cast %9 : vector<32x5xf32> to vector<32x5x1xf32>
    %11 = tpu.reciprocal %10 {approx = true} : vector<32x5x1xf32> -> vector<32x5x1xf32>
    %12 = vector.broadcast %11 : vector<32x5x1xf32> to vector<32x5x4xf32>
    %13 = arith.mulf %8, %12 : vector<32x5x4xf32>
    "tpu.trace_start"() <{level = 10 : i32, message = "gqk,gkd->gqd"}> : () -> ()
    %cst_10 = arith.constant dense<0.000000e+00> : vector<32x5x32xf32>
    %14 = tpu.matmul %13, %2, %cst_10 {dimension_numbers = #tpu.dot_dimension_numbers<[2], [1], [1], [2], [0, 0, 0, 1, 1, 2], [0], [0]>} : vector<32x5x4xf32>, vector<32x4x32xf32>, vector<32x5x32xf32> -> vector<32x5x32xf32>
    "tpu.trace_stop"() : () -> ()
    %c0_11 = arith.constant 0 : index
    %c0_12 = arith.constant 0 : index
    %c0_13 = arith.constant 0 : index
    %15 = vector.load %arg4[%c0_11, %c0_12, %c0_13] : memref<32x5x32xf32, #tpu.memory_space<vmem>>, vector<32x5x32xf32>
    tpu.vector_store %arg4[%c0_11, %c0_12, %c0_13], %14 {strides = array<i32>} : memref<32x5x32xf32, #tpu.memory_space<vmem>>, vector<32x5x32xf32>,
    return
  }
  func.func @transform_0(%arg0: i32) -> (i32, i32, i32) {
    %c0_i32 = arith.constant 0 : i32
    %c0_i32_0 = arith.constant 0 : i32
    %c0_i32_1 = arith.constant 0 : i32
    return %arg0, %c0_i32, %c0_i32_0 : i32, i32, i32
  }
  func.func @transform_1(%arg0: i32) -> (i32, i32, i32) {
    %c0_i32 = arith.constant 0 : i32
    %c0_i32_0 = arith.constant 0 : i32
    %c0_i32_1 = arith.constant 0 : i32
    return %arg0, %c0_i32, %c0_i32_0 : i32, i32, i32
  }
  func.func @transform_2(%arg0: i32) -> (i32, i32, i32) {
    %c0_i32 = arith.constant 0 : i32
    %c0_i32_0 = arith.constant 0 : i32
    %c0_i32_1 = arith.constant 0 : i32
    return %arg0, %c0_i32, %c0_i32_0 : i32, i32, i32
  }
  func.func @transform_3(%arg0: i32) -> (i32, i32, i32) {
    %c0_i32 = arith.constant 0 : i32
    %c0_i32_0 = arith.constant 0 : i32
    %c0_i32_1 = arith.constant 0 : i32
    return %arg0, %c0_i32, %c0_i32_0 : i32, i32, i32
  }
}

</mosaic_0001>

<bundles_post_ra>
// kernel: tpu_custom_call.1
= control target key start
LH: loop header
LB: loop body
LE: loop exit
PB: predicated region body
PF: predicated region fallthrough
CT: control target
= control target key end

     0   :  { %vm110_vm0 = vcmask 261120   ;;  %v6073_v0 = vmov 0.0   ;;  %vm6074_vm1 = vmmov 0   ;;  %vm2543_vm2 = vcmask 28672   ;;  %s7151_s1 = inlined_call_operand.vmem [shape: f32[32,4,32], index: 1, kind: input, shape index: {}]   ;;  %s7152_s0 = inlined_call_operand.vmem [shape: f32[32,5,32], index: 0, kind: input, shape index: {}]   ;;  %s7153_s2 = inlined_call_operand.vmem [shape: f32[32,4,32], index: 2, kind: input, shape index: {}]   ;;  %s7154_s3 = inlined_call_operand.vmem [shape: f32[32,5,32], index: 3, kind: output, shape index: {}]  }
   0x1   :  { %5623 = vmatprep.subr.mxu0 %v6073_v0  ;;  %v46_v1 = vld [vmem:[%s7151_s1] sm:$0xf]  ;;  %5625 = vmatprep.mubr.msk.f32.mxu0 %vm6074_vm1, %v6073_v0  ;;  %v47_v2 = vld [vmem:[%s7151_s1 + $0x4] sm:$0xf]  ;;  %v48_v4 = vld [vmem:[%s7151_s1 + $0x8] sm:$0xf] }
   0x2   :  { %5624 = vmatpush3.xpose.msk.msra.mxu0 %vm110_vm0, %v46_v1  ;;  %v14_v3 = vld [vmem:[%s7152_s0] sm:$0x1f]  ;;  %5628 = vmatprep.subr.mxu1 %v6073_v0  ;;  %v15_v5 = vld [vmem:[%s7152_s0 + $0x8] sm:$0x1f]  ;;  %v16_v7 = vld [vmem:[%s7152_s0 + $0x10] sm:$0x1f] }
   0x3   :  { %5633 = vmatprep.subr.mxu0 %v6073_v0  ;;  %5629 = vmatpush3.xpose.msk.msra.mxu1 %vm110_vm0, %v47_v2  ;;  %v49_v6 = vld [vmem:[%s7151_s1 + $0xc] sm:$0xf]  ;;  %v50_v8 = vld [vmem:[%s7151_s1 + $0x10] sm:$0xf]  ;;  %v17_v9 = vld [vmem:[%s7152_s0 + $0x18] sm:$0x1f] }
   0x4   :  { %5630 = vmatprep.mubr.msk.f32.mxu1 %vm6074_vm1, %v6073_v0  ;;  %5638 = vmatprep.subr.mxu1 %v6073_v0  ;;  %v51_v10 = vld [vmem:[%s7151_s1 + $0x14] sm:$0xf]  ;;  %v18_v11 = vld [vmem:[%s7152_s0 + $0x20] sm:$0x1f]  ;;  %v52_v12 = vld [vmem:[%s7151_s1 + $0x18] sm:$0xf] }
   0x5   :  { %5626 = vmatmul.mubr.msk.f32.vlgmr.msra.gmra.mrb[0].mxu0 %vm110_vm0, %v14_v3  ;;  %v19_v13 = vld [vmem:[%s7152_s0 + $0x28] sm:$0x1f]  ;;  %v53_v14 = vld [vmem:[%s7151_s1 + $0x1c] sm:$0xf]  ;;  %v20_v15 = vld [vmem:[%s7152_s0 + $0x30] sm:$0x1f] }
   0x6   :  { %5634 = vmatpush3.xpose.msk.msra.mxu0 %vm110_vm0, %v48_v4  ;;  %5635 = vmatprep.mubr.msk.f32.mxu0 %vm6074_vm1, %v6073_v0  ;;  %v54_v16 = vld [vmem:[%s7151_s1 + $0x20] sm:$0xf]  ;;  %v21_v17 = vld [vmem:[%s7152_s0 + $0x38] sm:$0x1f]  ;;  %v55_v18 = vld [vmem:[%s7151_s1 + $0x24] sm:$0xf] }
   0x7   :  { %5631 = vmatmul.mubr.msk.f32.vlgmr.msra.gmra.mrb[0].mxu1 %vm110_vm0, %v15_v5  ;;  %5643 = vmatprep.subr.mxu0 %v6073_v0  ;;  %v22_v19 = vld [vmem:[%s7152_s0 + $0x40] sm:$0x1f]  ;;  %v56_v20 = vld [vmem:[%s7151_s1 + $0x28] sm:$0xf]  ;;  %v57_v22 = vld [vmem:[%s7151_s1 + $0x2c] sm:$0xf] }
   0x8   :  { %5639 = vmatpush3.xpose.msk.msra.mxu1 %vm110_vm0, %v49_v6  ;;  %5640 = vmatprep.mubr.msk.f32.mxu1 %vm6074_vm1, %v6073_v0  ;;  %v23_v21 = vld [vmem:[%s7152_s0 + $0x48] sm:$0x1f]  ;;  %v24_v23 = vld [vmem:[%s7152_s0 + $0x50] sm:$0x1f]  ;;  %v25_v25 = vld [vmem:[%s7152_s0 + $0x58] sm:$0x1f] }
   0x9   :  { %5636 = vmatmul.mubr.msk.f32.vlgmr.msra.gmra.mrb[2].mxu0 %vm110_vm0, %v16_v7  ;;  %5648 = vmatprep.subr.mxu1 %v6073_v0  ;;  %v58_v24 = vld [vmem:[%s7151_s1 + $0x30] sm:$0xf]  ;;  %v59_v26 = vld [vmem:[%s7151_s1 + $0x34] sm:$0xf]  ;;  %v26_v27 = vld [vmem:[%s7152_s0 + $0x60] sm:$0x1f] }
   0xa   :  { %5644 = vmatpush3.xpose.msk.msra.mxu0 %vm110_vm0, %v50_v8  ;;  %5645 = vmatprep.mubr.msk.f32.mxu0 %vm6074_vm1, %v6073_v0  ;;  %v60_v28 = vld [vmem:[%s7151_s1 + $0x38] sm:$0xf]  ;;  %v27_v29 = vld [vmem:[%s7152_s0 + $0x68] sm:$0x1f]  ;;  %v61_v30 = vld [vmem:[%s7151_s1 + $0x3c] sm:$0xf] }
   0xb   :  { %5641 = vmatmul.mubr.msk.f32.vlgmr.msra.gmra.mrb[2].mxu1 %vm110_vm0, %v17_v9  ;;  %5653 = vmatprep.subr.mxu0 %v6073_v0  ;;  %v28_v31 = vld [vmem:[%s7152_s0 + $0x70] sm:$0x1f]  ;;  %v62_v32 = vld [vmem:[%s7151_s1 + $0x40] sm:$0xf]  ;;  %v29_v33 = vld [vmem:[%s7152_s0 + $0x78] sm:$0x1f] }
   0xc   :  { %5649 = vmatpush3.xpose.msk.msra.mxu1 %vm110_vm0, %v51_v10  ;;  %5650 = vmatprep.mubr.msk.f32.mxu1 %vm6074_vm1, %v6073_v0  ;;  %v63_v34 = vld [vmem:[%s7151_s1 + $0x44] sm:$0xf]  ;;  %v64_v36 = vld [vmem:[%s7151_s1 + $0x48] sm:$0xf]  ;;  %v65_v38 = vld [vmem:[%s7151_s1 + $0x4c] sm:$0xf] }
   0xd   :  { %5646 = vmatmul.mubr.msk.f32.vlgmr.msra.gmra.mrb[4].mxu0 %vm110_vm0, %v18_v11  ;;  %5658 = vmatprep.subr.mxu1 %v6073_v0  ;;  %v30_v35 = vld [vmem:[%s7152_s0 + $0x80] sm:$0x1f]  ;;  %v31_v37 = vld [vmem:[%s7152_s0 + $0x88] sm:$0x1f]  ;;  %v32_v39 = vld [vmem:[%s7152_s0 + $0x90] sm:$0x1f] }
   0xe   :  { %5654 = vmatpush3.xpose.msk.msra.mxu0 %vm110_vm0, %v52_v12  ;;  %5655 = vmatprep.mubr.msk.f32.mxu0 %vm6074_vm1, %v6073_v0  ;;  %v66_v40 = vld [vmem:[%s7151_s1 + $0x50] sm:$0xf]  ;;  %v33_v41 = vld [vmem:[%s7152_s0 + $0x98] sm:$0x1f]  ;;  %v67_v42 = vld [vmem:[%s7151_s1 + $0x54] sm:$0xf] }
   0xf   :  { %5651 = vmatmul.mubr.msk.f32.vlgmr.msra.gmra.mrb[4].mxu1 %vm110_vm0, %v19_v13  ;;  %5663 = vmatprep.subr.mxu0 %v6073_v0  ;;  %v34_v43 = vld [vmem:[%s7152_s0 + $0xa0] sm:$0x1f]  ;;  %v68_v44 = vld [vmem:[%s7151_s1 + $0x58] sm:$0xf]  ;;  %v35_v45 = vld [vmem:[%s7152_s0 + $0xa8] sm:$0x1f] }
  0x10   :  { %5659 = vmatpush3.xpose.msk.msra.mxu1 %vm110_vm0, %v53_v14  ;;  %5660 = vmatprep.mubr.msk.f32.mxu1 %vm6074_vm1, %v6073_v0  ;;  %v69_v46 = vld [vmem:[%s7151_s1 + $0x5c] sm:$0xf]  ;;  %v36_v47 = vld [vmem:[%s7152_s0 + $0xb0] sm:$0x1f]  ;;  %v70_v48 = vld [vmem:[%s7151_s1 + $0x60] sm:$0xf] }
  0x11   :  { %5656 = vmatmul.mubr.msk.f32.vlgmr.msra.gmra.mrb[6].mxu0 %vm110_vm0, %v20_v15  ;;  %5668 = vmatprep.subr.mxu1 %v6073_v0  ;;  %v37_v49 = vld [vmem:[%s7152_s0 + $0xb8] sm:$0x1f]  ;;  %v71_v50 = vld [vmem:[%s7151_s1 + $0x64] sm:$0xf]  ;;  %v72_v52 = vld [vmem:[%s7151_s1 + $0x68] sm:$0xf] }
  0x12   :  { %5664 = vmatpush3.xpose.msk.msra.mxu0 %vm110_vm0, %v54_v16  ;;  %5665 = vmatprep.mubr.msk.f32.mxu0 %vm6074_vm1, %v6073_v0  ;;  %v38_v51 = vld [vmem:[%s7152_s0 + $0xc0] sm:$0x1f]  ;;  %v39_v53 = vld [vmem:[%s7152_s0 + $0xc8] sm:$0x1f]  ;;  %v40_v55 = vld [vmem:[%s7152_s0 + $0xd0] sm:$0x1f] }
  0x13   :  { %5661 = vmatmul.mubr.msk.f32.vlgmr.msra.gmra.mrb[6].mxu1 %vm110_vm0, %v21_v17  ;;  %5673 = vmatprep.subr.mxu0 %v6073_v0  ;;  %v73_v54 = vld [vmem:[%s7151_s1 + $0x6c] sm:$0xf]  ;;  %v74_v56 = vld [vmem:[%s7151_s1 + $0x70] sm:$0xf]  ;;  %v41_v57 = vld [vmem:[%s7152_s0 + $0xd8] sm:$0x1f] }
  0x14   :  { %5669 = vmatpush3.xpose.msk.msra.mxu1 %vm110_vm0, %v55_v18  ;;  %5670 = vmatprep.mubr.msk.f32.mxu1 %vm6074_vm1, %v6073_v0  ;;  %v75_v58 = vld [vmem:[%s7151_s1 + $0x74] sm:$0xf]  ;;  %v42_v59 = vld [vmem:[%s7152_s0 + $0xe0] sm:$0x1f]  ;;  %v76_v60 = vld [vmem:[%s7151_s1 + $0x78] sm:$0xf] }
  0x15   :  { %5666 = vmatmul.mubr.msk.f32.vlgmr.msra.gmra.mrb[8].mxu0 %vm110_vm0, %v22_v19  ;;  %5678 = vmatprep.subr.mxu1 %v6073_v0  ;;  %v43_v61 = vld [vmem:[%s7152_s0 + $0xe8] sm:$0x1f]  ;;  %v77_v62 = vld [vmem:[%s7151_s1 + $0x7c] sm:$0xf]  ;;  %v44_v63 = vld [vmem:[%s7152_s0 + $0xf0] sm:$0x1f] }
  0x16   :  { %5674 = vmatpush3.xpose.msk.msra.mxu0 %vm110_vm0, %v56_v20  ;;  %5675 = vmatprep.mubr.msk.f32.mxu0 %vm6074_vm1, %v6073_v0  ;;  %v45_v1 = vld [vmem:[%s7152_s0 + $0xf8] sm:$0x1f]  ;;  %vm2900_vm3 = vcmask 1043456   ;;  %vm2896_vm4 = vcmask 31744   ;;  %vm5330_vm5 = vcmask 258048  }
  0x17   :  { %5671 = vmatmul.mubr.msk.f32.vlgmr.msra.gmra.mrb[8].mxu1 %vm110_vm0, %v23_v21  ;;  %5683 = vmatprep.subr.mxu0 %v6073_v0 }
  0x18   :  { %5679 = vmatpush3.xpose.msk.msra.mxu1 %vm110_vm0, %v57_v22  ;;  %5680 = vmatprep.mubr.msk.f32.mxu1 %vm6074_vm1, %v6073_v0 }
  0x19   :  { %5676 = vmatmul.mubr.msk.f32.vlgmr.msra.gmra.mrb[10].mxu0 %vm110_vm0, %v24_v23  ;;  %5688 = vmatprep.subr.mxu1 %v6073_v0 }
  0x1a   :  { %5684 = vmatpush3.xpose.msk.msra.mxu0 %vm110_vm0, %v58_v24  ;;  %5685 = vmatprep.mubr.msk.f32.mxu0 %vm6074_vm1, %v6073_v0 }
  0x1b   :  { %5681 = vmatmul.mubr.msk.f32.vlgmr.msra.gmra.mrb[10].mxu1 %vm110_vm0, %v25_v25  ;;  %5693 = vmatprep.subr.mxu0 %v6073_v0 }
  0x1c   :  { %5689 = vmatpush3.xpose.msk.msra.mxu1 %vm110_vm0, %v59_v26  ;;  %5690 = vmatprep.mubr.msk.f32.mxu1 %vm6074_vm1, %v6073_v0 }
  0x1d   :  { %5686 = vmatmul.mubr.msk.f32.vlgmr.msra.gmra.mrb[12].mxu0 %vm110_vm0, %v26_v27  ;;  %5698 = vmatprep.subr.mxu1 %v6073_v0 }
  0x1e   :  { %5694 = vmatpush3.xpose.msk.msra.mxu0 %vm110_vm0, %v60_v28  ;;  %5695 = vmatprep.mubr.msk.f32.mxu0 %vm6074_vm1, %v6073_v0 }
  0x1f   :  { %5691 = vmatmul.mubr.msk.f32.vlgmr.msra.gmra.mrb[12].mxu1 %vm110_vm0, %v27_v29  ;;  %5703 = vmatprep.subr.mxu0 %v6073_v0 }
  0x20   :  { %5699 = vmatpush3.xpose.msk.msra.mxu1 %vm110_vm0, %v61_v30  ;;  %5700 = vmatprep.mubr.msk.f32.mxu1 %vm6074_vm1, %v6073_v0 }
  0x21   :  { %5696 = vmatmul.mubr.msk.f32.vlgmr.msra.gmra.mrb[14].mxu0 %vm110_vm0, %v28_v31  ;;  %5708 = vmatprep.subr.mxu1 %v6073_v0 }
  0x22   :  { %5704 = vmatpush3.xpose.msk.msra.mxu0 %vm110_vm0, %v62_v32  ;;  %5705 = vmatprep.mubr.msk.f32.mxu0 %vm6074_vm1, %v6073_v0 }
  0x23   :  { %5701 = vmatmul.mubr.msk.f32.vlgmr.msra.gmra.mrb[14].mxu1 %vm110_vm0, %v29_v33  ;;  %5713 = vmatprep.subr.mxu0 %v6073_v0 }
  0x24   :  { %5709 = vmatpush3.xpose.msk.msra.mxu1 %vm110_vm0, %v63_v34  ;;  %5710 = vmatprep.mubr.msk.f32.mxu1 %vm6074_vm1, %v6073_v0 }
  0x25   :  { %5706 = vmatmul.mubr.msk.f32.vlgmr.msra.gmra.mrb[16].mxu0 %vm110_vm0, %v30_v35  ;;  %5718 = vmatprep.subr.mxu1 %v6073_v0 }
  0x26   :  { %5714 = vmatpush3.xpose.msk.msra.mxu0 %vm110_vm0, %v64_v36  ;;  %5715 = vmatprep.mubr.msk.f32.mxu0 %vm6074_vm1, %v6073_v0 }
  0x27   :  { %5711 = vmatmul.mubr.msk.f32.vlgmr.msra.gmra.mrb[16].mxu1 %vm110_vm0, %v31_v37  ;;  %5723 = vmatprep.subr.mxu0 %v6073_v0 }
  0x28   :  { %5719 = vmatpush3.xpose.msk.msra.mxu1 %vm110_vm0, %v65_v38  ;;  %5720 = vmatprep.mubr.msk.f32.mxu1 %vm6074_vm1, %v6073_v0 }
  0x29   :  { %5716 = vmatmul.mubr.msk.f32.vlgmr.msra.gmra.mrb[18].mxu0 %vm110_vm0, %v32_v39  ;;  %5728 = vmatprep.subr.mxu1 %v6073_v0 }
  0x2a   :  { %5724 = vmatpush3.xpose.msk.msra.mxu0 %vm110_vm0, %v66_v40  ;;  %5725 = vmatprep.mubr.msk.f32.mxu0 %vm6074_vm1, %v6073_v0 }
  0x2b   :  { %5721 = vmatmul.mubr.msk.f32.vlgmr.msra.gmra.mrb[18].mxu1 %vm110_vm0, %v33_v41  ;;  %5733 = vmatprep.subr.mxu0 %v6073_v0 }
  0x2c   :  { %5729 = vmatpush3.xpose.msk.msra.mxu1 %vm110_vm0, %v67_v42  ;;  %5730 = vmatprep.mubr.msk.f32.mxu1 %vm6074_vm1, %v6073_v0 }
  0x2d   :  { %5726 = vmatmul.mubr.msk.f32.vlgmr.msra.gmra.mrb[20].mxu0 %vm110_vm0, %v34_v43  ;;  %5738 = vmatprep.subr.mxu1 %v6073_v0 }
  0x2e   :  { %5734 = vmatpush3.xpose.msk.msra.mxu0 %vm110_vm0, %v68_v44  ;;  %5735 = vmatprep.mubr.msk.f32.mxu0 %vm6074_vm1, %v6073_v0 }
  0x2f   :  { %5731 = vmatmul.mubr.msk.f32.vlgmr.msra.gmra.mrb[20].mxu1 %vm110_vm0, %v35_v45  ;;  %5743 = vmatprep.subr.mxu0 %v6073_v0 }
  0x30   :  { %5739 = vmatpush3.xpose.msk.msra.mxu1 %vm110_vm0, %v69_v46  ;;  %5740 = vmatprep.mubr.msk.f32.mxu1 %vm6074_vm1, %v6073_v0 }
  0x31   :  { %5736 = vmatmul.mubr.msk.f32.vlgmr.msra.gmra.mrb[22].mxu0 %vm110_vm0, %v36_v47  ;;  %5748 = vmatprep.subr.mxu1 %v6073_v0 }
  0x32   :  { %5744 = vmatpush3.xpose.msk.msra.mxu0 %vm110_vm0, %v70_v48  ;;  %5745 = vmatprep.mubr.msk.f32.mxu0 %vm6074_vm1, %v6073_v0 }
  0x33   :  { %5741 = vmatmul.mubr.msk.f32.vlgmr.msra.gmra.mrb[22].mxu1 %vm110_vm0, %v37_v49  ;;  %5753 = vmatprep.subr.mxu0 %v6073_v0 }
  0x34   :  { %5749 = vmatpush3.xpose.msk.msra.mxu1 %vm110_vm0, %v71_v50  ;;  %5750 = vmatprep.mubr.msk.f32.mxu1 %vm6074_vm1, %v6073_v0 }
  0x35   :  { %5746 = vmatmul.mubr.msk.f32.vlgmr.msra.gmra.mrb[24].mxu0 %vm110_vm0, %v38_v51  ;;  %5758 = vmatprep.subr.mxu1 %v6073_v0 }
  0x36   :  { %5754 = vmatpush3.xpose.msk.msra.mxu0 %vm110_vm0, %v72_v52  ;;  %5755 = vmatprep.mubr.msk.f32.mxu0 %vm6074_vm1, %v6073_v0 }
  0x37   :  { %5751 = vmatmul.mubr.msk.f32.vlgmr.msra.gmra.mrb[24].mxu1 %vm110_vm0, %v39_v53  ;;  %5763 = vmatprep.subr.mxu0 %v6073_v0 }
  0x38   :  { %5759 = vmatpush3.xpose.msk.msra.mxu1 %vm110_vm0, %v73_v54  ;;  %5760 = vmatprep.mubr.msk.f32.mxu1 %vm6074_vm1, %v6073_v0 }
  0x39   :  { %5756 = vmatmul.mubr.msk.f32.vlgmr.msra.gmra.mrb[26].mxu0 %vm110_vm0, %v40_v55  ;;  %5768 = vmatprep.subr.mxu1 %v6073_v0 }
  0x3a   :  { %5764 = vmatpush3.xpose.msk.msra.mxu0 %vm110_vm0, %v74_v56  ;;  %5765 = vmatprep.mubr.msk.f32.mxu0 %vm6074_vm1, %v6073_v0 }
  0x3b   :  { %5761 = vmatmul.mubr.msk.f32.vlgmr.msra.gmra.mrb[26].mxu1 %vm110_vm0, %v41_v57  ;;  %5773 = vmatprep.subr.mxu0 %v6073_v0 }
  0x3c   :  { %5769 = vmatpush3.xpose.msk.msra.mxu1 %vm110_vm0, %v75_v58  ;;  %5770 = vmatprep.mubr.msk.f32.mxu1 %vm6074_vm1, %v6073_v0 }
  0x3d   :  { %5766 = vmatmul.mubr.msk.f32.vlgmr.msra.gmra.mrb[28].mxu0 %vm110_vm0, %v42_v59  ;;  %5778 = vmatprep.subr.mxu1 %v6073_v0 }
  0x3e   :  { %5774 = vmatpush3.xpose.msk.msra.mxu0 %vm110_vm0, %v76_v60  ;;  %5775 = vmatprep.mubr.msk.f32.mxu0 %vm6074_vm1, %v6073_v0 }
  0x3f   :  { %5771 = vmatmul.mubr.msk.f32.vlgmr.msra.gmra.mrb[28].mxu1 %vm110_vm0, %v43_v61  ;;  %5783 = vmatprep.subr.mxu0 %v6073_v0 }
  0x40   :  { %5779 = vmatpush3.xpose.msk.msra.mxu1 %vm110_vm0, %v77_v62  ;;  %5780 = vmatprep.mubr.msk.f32.mxu1 %vm6074_vm1, %v6073_v0 }
  0x41   :  { %5776 = vmatmul.mubr.msk.f32.vlgmr.msra.gmra.mrb[30].mxu0 %vm110_vm0, %v44_v63  ;;  %5788 = vmatprep.subr.mxu1 %v6073_v0 }
  0x42   :  { %5785 = vmatprep.mubr.msk.f32.mxu0 %vm6074_vm1, %v6073_v0 }
  0x43   :  { %5781 = vmatmul.mubr.msk.f32.vlgmr.msra.gmra.mrb[30].mxu1 %vm110_vm0, %v45_v1 }
  0x44   :  { %5790 = vmatprep.mubr.msk.f32.mxu1 %vm6074_vm1, %v6073_v0 }
  0xd8   :  { %v6453_v2 = vpop.f32.mrb[0].mxu0 }
  0xd9   :  { %v5627_v3 = vpop.f32.mrb[1].mxu0  ;;  %v2544_v4 = vsel %vm2543_vm2, %v6453_v2, -inf }
  0xda   :  { %2545 = vmax.xlane.f32.xlu0 %v2544_v4  ;;  %v6457_v5 = vpop.f32.mrb[0].mxu1 }
  0xdb   :  { %v5632_v6 = vpop.f32.mrb[1].mxu1  ;;  %v2547_v7 = vsel %vm2543_vm2, %v6457_v5, -inf }
  0xdc   :  { %v6461_v8 = vpop.f32.mrb[2].mxu0 }
  0xdd   :  { %v5637_v9 = vpop.f32.mrb[3].mxu0  ;;  %v2550_v10 = vsel %vm2543_vm2, %v6461_v8, -inf }
  0xde   :  { %2548 = vmax.xlane.f32.xlu0 %v2547_v7  ;;  %2551 = vmax.xlane.f32.xlu1 %v2550_v10  ;;  %v6465_v11 = vpop.f32.mrb[2].mxu1 }
  0xdf   :  { %v5642_v12 = vpop.f32.mrb[3].mxu1  ;;  %v2553_v13 = vsel %vm2543_vm2, %v6465_v11, -inf }
  0xe0   :  { %v6469_v14 = vpop.f32.mrb[4].mxu0 }
  0xe1   :  { %v2556_v15 = vsel %vm2543_vm2, %v6469_v14, -inf  ;;  %v5647_v16 = vpop.f32.mrb[5].mxu0 }
  0xe2   :  { %2554 = vmax.xlane.f32.xlu1 %v2553_v13  ;;  %2557 = vmax.xlane.f32.xlu0 %v2556_v15  ;;  %v6473_v17 = vpop.f32.mrb[4].mxu1 }
  0xe3   :  { %v5652_v18 = vpop.f32.mrb[5].mxu1  ;;  %v2559_v19 = vsel %vm2543_vm2, %v6473_v17, -inf }
  0xe4   :  { %v6477_v20 = vpop.f32.mrb[6].mxu0 }
  0xe5   :  { %v2562_v21 = vsel %vm2543_vm2, %v6477_v20, -inf  ;;  %v5657_v22 = vpop.f32.mrb[7].mxu0 }
  0xe6   :  { %2560 = vmax.xlane.f32.xlu1 %v2559_v19  ;;  %2563 = vmax.xlane.f32.xlu0 %v2562_v21  ;;  %v6481_v23 = vpop.f32.mrb[6].mxu1 }
  0xe7   :  { %v5662_v24 = vpop.f32.mrb[7].mxu1  ;;  %v2565_v25 = vsel %vm2543_vm2, %v6481_v23, -inf }
  0xe8   :  { %v6485_v26 = vpop.f32.mrb[8].mxu0 }
  0xe9   :  { %v2568_v27 = vsel %vm2543_vm2, %v6485_v26, -inf  ;;  %v5667_v28 = vpop.f32.mrb[9].mxu0 }
  0xea   :  { %2566 = vmax.xlane.f32.xlu1 %v2565_v25  ;;  %2569 = vmax.xlane.f32.xlu0 %v2568_v27  ;;  %v6489_v29 = vpop.f32.mrb[8].mxu1 }
  0xeb   :  { %v5672_v30 = vpop.f32.mrb[9].mxu1  ;;  %v2571_v31 = vsel %vm2543_vm2, %v6489_v29, -inf }
  0xec   :  { %v6493_v32 = vpop.f32.mrb[10].mxu0 }
  0xed   :  { %v2574_v33 = vsel %vm2543_vm2, %v6493_v32, -inf  ;;  %v5677_v34 = vpop.f32.mrb[11].mxu0 }
  0xee   :  { %2572 = vmax.xlane.f32.xlu1 %v2571_v31  ;;  %2575 = vmax.xlane.f32.xlu0 %v2574_v33  ;;  %v6497_v35 = vpop.f32.mrb[10].mxu1 }
  0xef   :  { %v5682_v36 = vpop.f32.mrb[11].mxu1  ;;  %v2577_v37 = vsel %vm2543_vm2, %v6497_v35, -inf }
  0xf0   :  { %v6501_v38 = vpop.f32.mrb[12].mxu0 }
  0xf1   :  { %v2580_v39 = vsel %vm2543_vm2, %v6501_v38, -inf  ;;  %v5687_v40 = vpop.f32.mrb[13].mxu0 }
  0xf2   :  { %2578 = vmax.xlane.f32.xlu1 %v2577_v37  ;;  %2581 = vmax.xlane.f32.xlu0 %v2580_v39  ;;  %v6505_v41 = vpop.f32.mrb[12].mxu1 }
  0xf3   :  { %v5692_v42 = vpop.f32.mrb[13].mxu1  ;;  %v2583_v43 = vsel %vm2543_vm2, %v6505_v41, -inf }
  0xf4   :  { %v6509_v44 = vpop.f32.mrb[14].mxu0 }
  0xf5   :  { %v2586_v45 = vsel %vm2543_vm2, %v6509_v44, -inf  ;;  %v5697_v46 = vpop.f32.mrb[15].mxu0 }
  0xf6   :  { %2584 = vmax.xlane.f32.xlu1 %v2583_v43  ;;  %2587 = vmax.xlane.f32.xlu0 %v2586_v45  ;;  %v6513_v47 = vpop.f32.mrb[14].mxu1 }
  0xf7   :  { %v5702_v48 = vpop.f32.mrb[15].mxu1  ;;  %v2589_v49 = vsel %vm2543_vm2, %v6513_v47, -inf }
  0xf8   :  { %v6517_v50 = vpop.f32.mrb[16].mxu0 }
  0xf9   :  { %v2592_v51 = vsel %vm2543_vm2, %v6517_v50, -inf  ;;  %v5707_v52 = vpop.f32.mrb[17].mxu0 }
  0xfa   :  { %2590 = vmax.xlane.f32.xlu1 %v2589_v49  ;;  %2593 = vmax.xlane.f32.xlu0 %v2592_v51  ;;  %v6521_v53 = vpop.f32.mrb[16].mxu1 }
  0xfb   :  { %v5712_v54 = vpop.f32.mrb[17].mxu1  ;;  %v2595_v55 = vsel %vm2543_vm2, %v6521_v53, -inf }
  0xfc   :  { %v6525_v56 = vpop.f32.mrb[18].mxu0 }
  0xfd   :  { %v2598_v57 = vsel %vm2543_vm2, %v6525_v56, -inf  ;;  %v5717_v58 = vpop.f32.mrb[19].mxu0 }
  0xfe   :  { %2596 = vmax.xlane.f32.xlu1 %v2595_v55  ;;  %2599 = vmax.xlane.f32.xlu0 %v2598_v57  ;;  %v6529_v59 = vpop.f32.mrb[18].mxu1 }
  0xff   :  { %v5722_v60 = vpop.f32.mrb[19].mxu1  ;;  %v2601_v61 = vsel %vm2543_vm2, %v6529_v59, -inf }
 0x100   :  { %v6533_v62 = vpop.f32.mrb[20].mxu0 }
 0x101   :  { %v2604_v63 = vsel %vm2543_vm2, %v6533_v62, -inf  ;;  %v5727_v1 = vpop.f32.mrb[21].mxu0 }
 0x102   :  { %2602 = vmax.xlane.f32.xlu1 %v2601_v61  ;;  %2605 = vmax.xlane.f32.xlu0 %v2604_v63  ;;  %v6537_v3 = vpop.f32.mrb[20].mxu1 }
 0x103   :  { %v5732_v4 = vpop.f32.mrb[21].mxu1  ;;  %v2607_v6 = vsel %vm2543_vm2, %v6537_v3, -inf }
 0x104   :  { %v6541_v7 = vpop.f32.mrb[22].mxu0 }
 0x105   :  { %v2610_v9 = vsel %vm2543_vm2, %v6541_v7, -inf  ;;  %v5737_v10 = vpop.f32.mrb[23].mxu0 }
 0x106   :  { %2608 = vmax.xlane.f32.xlu1 %v2607_v6  ;;  %2611 = vmax.xlane.f32.xlu0 %v2610_v9  ;;  %v6545_v12 = vpop.f32.mrb[22].mxu1 }
 0x107   :  { %v5742_v13 = vpop.f32.mrb[23].mxu1  ;;  %v2613_v15 = vsel %vm2543_vm2, %v6545_v12, -inf }
 0x108   :  { %v6549_v16 = vpop.f32.mrb[24].mxu0 }
 0x109   :  { %v2616_v18 = vsel %vm2543_vm2, %v6549_v16, -inf  ;;  %v5747_v19 = vpop.f32.mrb[25].mxu0 }
 0x10a   :  { %2614 = vmax.xlane.f32.xlu1 %v2613_v15  ;;  %2617 = vmax.xlane.f32.xlu0 %v2616_v18  ;;  %v6553_v21 = vpop.f32.mrb[24].mxu1 }
 0x10b   :  { %v5752_v22 = vpop.f32.mrb[25].mxu1  ;;  %v2619_v24 = vsel %vm2543_vm2, %v6553_v21, -inf }
 0x10c   :  { %v6557_v25 = vpop.f32.mrb[26].mxu0 }
 0x10d   :  { %v2622_v27 = vsel %vm2543_vm2, %v6557_v25, -inf  ;;  %v5757_v28 = vpop.f32.mrb[27].mxu0 }
 0x10e   :  { %2620 = vmax.xlane.f32.xlu1 %v2619_v24  ;;  %2623 = vmax.xlane.f32.xlu0 %v2622_v27  ;;  %v6561_v30 = vpop.f32.mrb[26].mxu1 }
 0x10f   :  { %v5762_v31 = vpop.f32.mrb[27].mxu1  ;;  %v2625_v33 = vsel %vm2543_vm2, %v6561_v30, -inf }
 0x110   :  { %v6565_v34 = vpop.f32.mrb[28].mxu0 }
 0x111   :  { %v2628_v36 = vsel %vm2543_vm2, %v6565_v34, -inf  ;;  %v5767_v37 = vpop.f32.mrb[29].mxu0 }
 0x112   :  { %2626 = vmax.xlane.f32.xlu1 %v2625_v33  ;;  %2629 = vmax.xlane.f32.xlu0 %v2628_v36  ;;  %v6569_v39 = vpop.f32.mrb[28].mxu1 }
 0x113   :  { %v5772_v40 = vpop.f32.mrb[29].mxu1  ;;  %v2631_v42 = vsel %vm2543_vm2, %v6569_v39, -inf }
 0x114   :  { %v6573_v43 = vpop.f32.mrb[30].mxu0 }
 0x115   :  { %v2634_v45 = vsel %vm2543_vm2, %v6573_v43, -inf  ;;  %v5777_v46 = vpop.f32.mrb[31].mxu0 }
 0x116   :  { %2632 = vmax.xlane.f32.xlu1 %v2631_v42  ;;  %2635 = vmax.xlane.f32.xlu0 %v2634_v45  ;;  %v6577_v48 = vpop.f32.mrb[30].mxu1 }
 0x117   :  { %v5782_v49 = vpop.f32.mrb[31].mxu1  ;;  %v2637_v51 = vsel %vm2543_vm2, %v6577_v48, -inf }
 0x11a   :  { %2638 = vmax.xlane.f32.xlu1 %v2637_v51 }
 0x167   :  { %v2546_v52 = vpop.xlane.xlu0 %2545 }
 0x168   :  { %v2640_v54 = vsub.f32 %v6453_v2, %v2546_v52 }
 0x16a   :  { %v2672_v55 = vmul.f32 1.442695, %v2640_v54 }
 0x16b   :  { %v2549_v57 = vpop.xlane.xlu0 %2548  ;;  %v2552_v58 = vpop.xlane.xlu1 %2551 }
 0x16c   :  { %5945 = vpow2.f32 %v2672_v55  ;;  %v2641_v60 = vsub.f32 %v6457_v5, %v2549_v57  ;;  %v2642_v61 = vsub.f32 %v6461_v8, %v2552_v58 }
 0x16e   :  { %v2674_v63 = vmul.f32 1.442695, %v2641_v60  ;;  %v2676_v1 = vmul.f32 1.442695, %v2642_v61 }
 0x16f   :  { %v2555_v4 = vpop.xlane.xlu1 %2554  ;;  %v2558_v6 = vpop.xlane.xlu0 %2557 }
 0x170   :  { %5947 = vpow2.f32 %v2674_v63  ;;  %v2643_v9 = vsub.f32 %v6465_v11, %v2555_v4  ;;  %v2644_v10 = vsub.f32 %v6469_v14, %v2558_v6 }
 0x171   :  { %5949 = vpow2.f32 %v2676_v1 }
 0x172   :  { %v2678_v13 = vmul.f32 1.442695, %v2643_v9  ;;  %v2680_v2 = vmul.f32 1.442695, %v2644_v10 }
 0x173   :  { %v2561_v15 = vpop.xlane.xlu1 %2560  ;;  %v2564_v18 = vpop.xlane.xlu0 %2563 }
 0x174   :  { %5951 = vpow2.f32 %v2678_v13  ;;  %v2645_v19 = vsub.f32 %v6473_v17, %v2561_v15  ;;  %v2646_v5 = vsub.f32 %v6477_v20, %v2564_v18 }
 0x175   :  { %5953 = vpow2.f32 %v2680_v2 }
 0x176   :  { %v6588_v8 = vpop.eup %5945  ;;  %v2682_v22 = vmul.f32 1.442695, %v2645_v19  ;;  %v2684_v24 = vmul.f32 1.442695, %v2646_v5 }
 0x177   :  { %v2567_v27 = vpop.xlane.xlu1 %2566  ;;  %v2570_v28 = vpop.xlane.xlu0 %2569  ;;  %v2736_v11 = vsel %vm2543_vm2, %v6588_v8, 0.0 }
 0x178   :  { %5955 = vpow2.f32 %v2682_v22  ;;  %v2647_v14 = vsub.f32 %v6481_v23, %v2567_v27  ;;  %v2648_v31 = vsub.f32 %v6485_v26, %v2570_v28  ;;  %2737 = vadd.xlane.f32.xlu0 %v2736_v11 }
 0x179   :  { %5957 = vpow2.f32 %v2684_v24 }
 0x17a   :  { %v6594_v17 = vpop.eup %5947  ;;  %v2686_v20 = vmul.f32 1.442695, %v2647_v14  ;;  %v2688_v33 = vmul.f32 1.442695, %v2648_v31 }
 0x17b   :  { %v6596_v36 = vpop.eup %5949  ;;  %v2573_v37 = vpop.xlane.xlu1 %2572  ;;  %v2739_v42 = vsel %vm2543_vm2, %v6594_v17, 0.0 }
 0x17c   :  { %v2576_v40 = vpop.xlane.xlu0 %2575  ;;  %5959 = vpow2.f32 %v2686_v20  ;;  %v2649_v45 = vsub.f32 %v6489_v29, %v2573_v37  ;;  %2740 = vadd.xlane.f32.xlu1 %v2739_v42  ;;  %v2742_v26 = vsel %vm2543_vm2, %v6596_v36, 0.0 }
 0x17d   :  { %v2650_v23 = vsub.f32 %v6493_v32, %v2576_v40  ;;  %5961 = vpow2.f32 %v2688_v33  ;;  %2743 = vadd.xlane.f32.xlu0 %v2742_v26 }
 0x17e   :  { %v6604_v46 = vpop.eup %5951  ;;  %v2690_v49 = vmul.f32 1.442695, %v2649_v45 }
 0x17f   :  { %v2692_v51 = vmul.f32 1.442695, %v2650_v23  ;;  %v6606_v52 = vpop.eup %5953  ;;  %v2579_v54 = vpop.xlane.xlu1 %2578  ;;  %v2745_v57 = vsel %vm2543_vm2, %v6604_v46, 0.0 }
 0x180   :  { %v2582_v55 = vpop.xlane.xlu0 %2581  ;;  %5963 = vpow2.f32 %v2690_v49  ;;  %v2651_v29 = vsub.f32 %v6497_v35, %v2579_v54  ;;  %2746 = vadd.xlane.f32.xlu1 %v2745_v57  ;;  %v2748_v58 = vsel %vm2543_vm2, %v6606_v52, 0.0 }
 0x181   :  { %v2652_v32 = vsub.f32 %v6501_v38, %v2582_v55  ;;  %5965 = vpow2.f32 %v2692_v51  ;;  %2749 = vadd.xlane.f32.xlu0 %v2748_v58 }
 0x182   :  { %v6614_v60 = vpop.eup %5955  ;;  %v2694_v61 = vmul.f32 1.442695, %v2651_v29 }
 0x183   :  { %v2696_v63 = vmul.f32 1.442695, %v2652_v32  ;;  %v6616_v1 = vpop.eup %5957  ;;  %v2585_v4 = vpop.xlane.xlu1 %2584  ;;  %v2751_v9 = vsel %vm2543_vm2, %v6614_v60, 0.0  ;;  %v78_v32 = vld [vmem:[%s7153_s2] sm:$0xf] }
 0x184   :  { %v2588_v6 = vpop.xlane.xlu0 %2587  ;;  %5967 = vpow2.f32 %v2694_v61  ;;  %v2653_v35 = vsub.f32 %v6505_v41, %v2585_v4  ;;  %2752 = vadd.xlane.f32.xlu1 %v2751_v9  ;;  %v2754_v10 = vsel %vm2543_vm2, %v6616_v1, 0.0  ;;  %5784 = vmatpush3.msk.msra.mxu0 %vm2900_vm3, %v78_v32 }
 0x185   :  { %v2654_v38 = vsub.f32 %v6509_v44, %v2588_v6  ;;  %5969 = vpow2.f32 %v2696_v63  ;;  %2755 = vadd.xlane.f32.xlu0 %v2754_v10  ;;  %5793 = vmatprep.subr.mxu0 %v6073_v0 }
 0x186   :  { %v6624_v13 = vpop.eup %5959  ;;  %v2698_v2 = vmul.f32 1.442695, %v2653_v35 }
 0x187   :  { %v2700_v15 = vmul.f32 1.442695, %v2654_v38  ;;  %v6626_v18 = vpop.eup %5961  ;;  %v2591_v19 = vpop.xlane.xlu1 %2590  ;;  %v2757_v22 = vsel %vm2543_vm2, %v6624_v13, 0.0 }
 0x188   :  { %v2594_v5 = vpop.xlane.xlu0 %2593  ;;  %5971 = vpow2.f32 %v2698_v2  ;;  %v2655_v41 = vsub.f32 %v6513_v47, %v2591_v19  ;;  %2758 = vadd.xlane.f32.xlu1 %v2757_v22  ;;  %v2760_v24 = vsel %vm2543_vm2, %v6626_v18, 0.0 }
 0x189   :  { %v2656_v44 = vsub.f32 %v6517_v50, %v2594_v5  ;;  %5973 = vpow2.f32 %v2700_v15  ;;  %2761 = vadd.xlane.f32.xlu0 %v2760_v24 }
 0x18a   :  { %v6634_v27 = vpop.eup %5963  ;;  %v2702_v28 = vmul.f32 1.442695, %v2655_v41 }
 0x18b   :  { %v2704_v11 = vmul.f32 1.442695, %v2656_v44  ;;  %v6636_v14 = vpop.eup %5965  ;;  %v2597_v31 = vpop.xlane.xlu1 %2596  ;;  %v2763_v33 = vsel %vm2543_vm2, %v6634_v27, 0.0 }
 0x18c   :  { %v2600_v20 = vpop.xlane.xlu0 %2599  ;;  %5975 = vpow2.f32 %v2702_v28  ;;  %v2657_v47 = vsub.f32 %v6521_v53, %v2597_v31  ;;  %2764 = vadd.xlane.f32.xlu1 %v2763_v33  ;;  %v2766_v37 = vsel %vm2543_vm2, %v6636_v14, 0.0 }
 0x18d   :  { %v2658_v50 = vsub.f32 %v6525_v56, %v2600_v20  ;;  %5977 = vpow2.f32 %v2704_v11  ;;  %2767 = vadd.xlane.f32.xlu0 %v2766_v37 }
 0x18e   :  { %v6644_v40 = vpop.eup %5967  ;;  %v2706_v42 = vmul.f32 1.442695, %v2657_v47 }
 0x18f   :  { %v2708_v45 = vmul.f32 1.442695, %v2658_v50  ;;  %v6646_v23 = vpop.eup %5969  ;;  %v2603_v26 = vpop.xlane.xlu1 %2602  ;;  %v2769_v51 = vsel %vm2543_vm2, %v6644_v40, 0.0 }
 0x190   :  { %v2606_v49 = vpop.xlane.xlu0 %2605  ;;  %5979 = vpow2.f32 %v2706_v42  ;;  %v2659_v53 = vsub.f32 %v6529_v59, %v2603_v26  ;;  %2770 = vadd.xlane.f32.xlu1 %v2769_v51  ;;  %v2772_v54 = vsel %vm2543_vm2, %v6646_v23, 0.0 }
 0x191   :  { %v2660_v56 = vsub.f32 %v6533_v62, %v2606_v49  ;;  %5981 = vpow2.f32 %v2708_v45  ;;  %2773 = vadd.xlane.f32.xlu0 %v2772_v54 }
 0x192   :  { %v6654_v55 = vpop.eup %5971  ;;  %v2710_v57 = vmul.f32 1.442695, %v2659_v53 }
 0x193   :  { %v2712_v29 = vmul.f32 1.442695, %v2660_v56  ;;  %v6659_v58 = vpop.eup %5973  ;;  %v2609_v61 = vpop.xlane.xlu1 %2608  ;;  %v2775_v62 = vsel %vm2543_vm2, %v6654_v55, 0.0 }
 0x194   :  { %v2612_v59 = vpop.xlane.xlu0 %2611  ;;  %5983 = vpow2.f32 %v2710_v57  ;;  %v2661_v63 = vsub.f32 %v6537_v3, %v2609_v61  ;;  %2776 = vadd.xlane.f32.xlu1 %v2775_v62  ;;  %v2778_v6 = vsel %vm2543_vm2, %v6659_v58, 0.0  ;;  %v79_v3 = vld [vmem:[%s7153_s2 + $0x4] sm:$0xf] }
 0x195   :  { %v2662_v4 = vsub.f32 %v6541_v7, %v2612_v59  ;;  %5985 = vpow2.f32 %v2712_v29  ;;  %2779 = vadd.xlane.f32.xlu0 %v2778_v6  ;;  %5789 = vmatpush3.msk.msra.mxu1 %vm2900_vm3, %v79_v3 }
 0x196   :  { %v6669_v9 = vpop.eup %5975  ;;  %v2714_v35 = vmul.f32 1.442695, %v2661_v63  ;;  %5798 = vmatprep.subr.mxu1 %v6073_v0 }
 0x197   :  { %v2716_v38 = vmul.f32 1.442695, %v2662_v4  ;;  %v6674_v10 = vpop.eup %5977  ;;  %v2615_v7 = vpop.xlane.xlu1 %2614  ;;  %v2781_v15 = vsel %vm2543_vm2, %v6669_v9, 0.0 }
 0x198   :  { %v2618_v2 = vpop.xlane.xlu0 %2617  ;;  %5987 = vpow2.f32 %v2714_v35  ;;  %v2663_v19 = vsub.f32 %v6545_v12, %v2615_v7  ;;  %2782 = vadd.xlane.f32.xlu1 %v2781_v15  ;;  %v2784_v22 = vsel %vm2543_vm2, %v6674_v10, 0.0 }
 0x199   :  { %v2664_v5 = vsub.f32 %v6549_v16, %v2618_v2  ;;  %5989 = vpow2.f32 %v2716_v38  ;;  %2785 = vadd.xlane.f32.xlu0 %v2784_v22 }
 0x19a   :  { %v6684_v41 = vpop.eup %5979  ;;  %v2718_v44 = vmul.f32 1.442695, %v2663_v19 }
 0x19b   :  { %v2720_v24 = vmul.f32 1.442695, %v2664_v5  ;;  %v6686_v28 = vpop.eup %5981  ;;  %v2621_v11 = vpop.xlane.xlu1 %2620  ;;  %v2787_v12 = vsel %vm2543_vm2, %v6684_v41, 0.0 }
 0x19c   :  { %v2624_v31 = vpop.xlane.xlu0 %2623  ;;  %5991 = vpow2.f32 %v2718_v44  ;;  %v2665_v16 = vsub.f32 %v6553_v21, %v2621_v11  ;;  %2788 = vadd.xlane.f32.xlu1 %v2787_v12  ;;  %v2790_v33 = vsel %vm2543_vm2, %v6686_v28, 0.0 }
 0x19d   :  { %v2666_v20 = vsub.f32 %v6557_v25, %v2624_v31  ;;  %5993 = vpow2.f32 %v2720_v24  ;;  %2791 = vadd.xlane.f32.xlu0 %v2790_v33 }
 0x19e   :  { %v6694_v47 = vpop.eup %5983  ;;  %v2722_v50 = vmul.f32 1.442695, %v2665_v16 }
 0x19f   :  { %v2724_v37 = vmul.f32 1.442695, %v2666_v20  ;;  %v6696_v42 = vpop.eup %5985  ;;  %v2627_v45 = vpop.xlane.xlu1 %2626  ;;  %v2793_v49 = vsel %vm2543_vm2, %v6694_v47, 0.0 }
 0x1a0   :  { %v2630_v26 = vpop.xlane.xlu0 %2629  ;;  %5995 = vpow2.f32 %v2722_v50  ;;  %v2667_v21 = vsub.f32 %v6561_v30, %v2627_v45  ;;  %2794 = vadd.xlane.f32.xlu1 %v2793_v49  ;;  %v2796_v51 = vsel %vm2543_vm2, %v6696_v42, 0.0 }
 0x1a1   :  { %v2668_v25 = vsub.f32 %v6565_v34, %v2630_v26  ;;  %5997 = vpow2.f32 %v2724_v37  ;;  %2797 = vadd.xlane.f32.xlu0 %v2796_v51  ;;  %v80_v51 = vld [vmem:[%s7153_s2 + $0x8] sm:$0xf] }
 0x1a2   :  { %v6704_v53 = vpop.eup %5987  ;;  %v2726_v56 = vmul.f32 1.442695, %v2667_v21 }
 0x1a3   :  { %v2728_v54 = vmul.f32 1.442695, %v2668_v25  ;;  %v6706_v57 = vpop.eup %5989  ;;  %v2633_v29 = vpop.xlane.xlu1 %2632  ;;  %v2799_v61 = vsel %vm2543_vm2, %v6704_v53, 0.0 }
 0x1a4   :  { %v2636_v32 = vpop.xlane.xlu0 %2635  ;;  %5999 = vpow2.f32 %v2726_v56  ;;  %v2669_v30 = vsub.f32 %v6569_v39, %v2633_v29  ;;  %2800 = vadd.xlane.f32.xlu1 %v2799_v61  ;;  %v2802_v59 = vsel %vm2543_vm2, %v6706_v57, 0.0  ;;  %v81_v61 = vld [vmem:[%s7153_s2 + $0xc] sm:$0xf] }
 0x1a5   :  { %v2670_v34 = vsub.f32 %v6573_v43, %v2636_v32  ;;  %6001 = vpow2.f32 %v2728_v54  ;;  %2803 = vadd.xlane.f32.xlu0 %v2802_v59  ;;  %v82_v59 = vld [vmem:[%s7153_s2 + $0x10] sm:$0xf] }
 0x1a6   :  { %v6714_v62 = vpop.eup %5991  ;;  %v2730_v63 = vmul.f32 1.442695, %v2669_v30 }
 0x1a7   :  { %v2732_v4 = vmul.f32 1.442695, %v2670_v34  ;;  %v6716_v6 = vpop.eup %5993  ;;  %v2639_v35 = vpop.xlane.xlu1 %2638  ;;  %v2805_v38 = vsel %vm2543_vm2, %v6714_v62, 0.0 }
 0x1a8   :  { %6003 = vpow2.f32 %v2730_v63  ;;  %v2671_v39 = vsub.f32 %v6577_v48, %v2639_v35  ;;  %2806 = vadd.xlane.f32.xlu1 %v2805_v38  ;;  %v2808_v43 = vsel %vm2543_vm2, %v6716_v6, 0.0 }
 0x1a9   :  { %6005 = vpow2.f32 %v2732_v4  ;;  %2809 = vadd.xlane.f32.xlu0 %v2808_v43 }
 0x1aa   :  { %v6723_v3 = vpop.eup %5995  ;;  %v2734_v7 = vmul.f32 1.442695, %v2671_v39 }
 0x1ab   :  { %v6725_v2 = vpop.eup %5997  ;;  %v2811_v15 = vsel %vm2543_vm2, %v6723_v3, 0.0 }
 0x1ac   :  { %6007 = vpow2.f32 %v2734_v7  ;;  %2812 = vadd.xlane.f32.xlu1 %v2811_v15  ;;  %v2814_v19 = vsel %vm2543_vm2, %v6725_v2, 0.0 }
 0x1ad   :  { %2815 = vadd.xlane.f32.xlu0 %v2814_v19  ;;  %v85_v19 = vld [vmem:[%s7153_s2 + $0x1c] sm:$0xf] }
 0x1ae   :  { %v6731_v48 = vpop.eup %5999 }
 0x1af   :  { %v6733_v5 = vpop.eup %6001  ;;  %v2817_v22 = vsel %vm2543_vm2, %v6731_v48, 0.0 }
 0x1b0   :  { %2818 = vadd.xlane.f32.xlu1 %v2817_v22  ;;  %v2820_v44 = vsel %vm2543_vm2, %v6733_v5, 0.0 }
 0x1b1   :  { %2821 = vadd.xlane.f32.xlu0 %v2820_v44 }
 0x1b2   :  { %v6739_v24 = vpop.eup %6003 }
 0x1b3   :  { %v6741_v11 = vpop.eup %6005  ;;  %v2823_v31 = vsel %vm2543_vm2, %v6739_v24, 0.0 }
 0x1b4   :  { %2824 = vadd.xlane.f32.xlu1 %v2823_v31  ;;  %v2826_v12 = vsel %vm2543_vm2, %v6741_v11, 0.0 }
 0x1b5   :  { %2827 = vadd.xlane.f32.xlu0 %v2826_v12 }
 0x1b6   :  { %v6747_v16 = vpop.eup %6007 }
 0x1b7   :  { %v2829_v20 = vsel %vm2543_vm2, %v6747_v16, 0.0 }
 0x1b8   :  { %2830 = vadd.xlane.f32.xlu1 %v2829_v20 }
 0x205   :  { %v2738_v33 = vpop.xlane.xlu0 %2737 }
 0x206   :  { %6009 = vrcp.f32 %v2738_v33  ;;  %v87_v33 = vld [vmem:[%s7153_s2 + $0x24] sm:$0xf] }
 0x209   :  { %v2741_v50 = vpop.xlane.xlu1 %2740 }
 0x20a   :  { %6011 = vrcp.f32 %v2741_v50  ;;  %v2744_v37 = vpop.xlane.xlu0 %2743 }
 0x20b   :  { %6013 = vrcp.f32 %v2744_v37 }
 0x20d   :  { %v2747_v45 = vpop.xlane.xlu1 %2746 }
 0x20e   :  { %6015 = vrcp.f32 %v2747_v45  ;;  %v2750_v26 = vpop.xlane.xlu0 %2749 }
 0x20f   :  { %6017 = vrcp.f32 %v2750_v26 }
 0x210   :  { %v6010_v49 = vpop.eup %6009 }
 0x211   :  { %v2864_v21 = vmul.f32 %v6010_v49, %v6588_v8  ;;  %v2753_v25 = vpop.xlane.xlu1 %2752 }
 0x212   :  { %6019 = vrcp.f32 %v2753_v25  ;;  %v2756_v56 = vpop.xlane.xlu0 %2755 }
 0x213   :  { %6021 = vrcp.f32 %v2756_v56  ;;  %5786 = vmatmul.mubr.msk.f32.vlgmr.msra.gmra.mrb[32].mxu0 %vm2896_vm4, %v2864_v21  ;;  %v89_v21 = vld [vmem:[%s7153_s2 + $0x2c] sm:$0xf] }
 0x214   :  { %v6012_v54 = vpop.eup %6011  ;;  %5794 = vmatpush3.msk.msra.mxu0 %vm2900_vm3, %v80_v51  ;;  %5795 = vmatprep.mubr.msk.f32.mxu0 %vm6074_vm1, %v6073_v0 }
 0x215   :  { %v6014_v29 = vpop.eup %6013  ;;  %v2865_v32 = vmul.f32 %v6012_v54, %v6594_v17  ;;  %v2759_v8 = vpop.xlane.xlu1 %2758  ;;  %5803 = vmatprep.subr.mxu0 %v6073_v0 }
 0x216   :  { %v2866_v30 = vmul.f32 %v6014_v29, %v6596_v36  ;;  %6023 = vrcp.f32 %v2759_v8  ;;  %v2762_v34 = vpop.xlane.xlu0 %2761  ;;  %v83_v36 = vld [vmem:[%s7153_s2 + $0x14] sm:$0xf] }
 0x217   :  { %6025 = vrcp.f32 %v2762_v34  ;;  %5791 = vmatmul.mubr.msk.f32.vlgmr.msra.gmra.mrb[32].mxu1 %vm2896_vm4, %v2865_v32  ;;  %v91_v32 = vld [vmem:[%s7153_s2 + $0x34] sm:$0xf] }
 0x218   :  { %v6016_v63 = vpop.eup %6015  ;;  %5796 = vmatmul.mubr.msk.f32.vlgmr.msra.gmra.mrb[34].mxu0 %vm2896_vm4, %v2866_v30  ;;  %5799 = vmatpush3.msk.msra.mxu1 %vm2900_vm3, %v81_v61 }
 0x219   :  { %v6018_v17 = vpop.eup %6017  ;;  %v2867_v4 = vmul.f32 %v6016_v63, %v6604_v46  ;;  %v2765_v35 = vpop.xlane.xlu1 %2764  ;;  %5800 = vmatprep.mubr.msk.f32.mxu1 %vm6074_vm1, %v6073_v0  ;;  %5804 = vmatpush3.msk.msra.mxu0 %vm2900_vm3, %v82_v59  ;;  %v84_v46 = vld [vmem:[%s7153_s2 + $0x18] sm:$0xf]  ;;  %v93_v63 = vld [vmem:[%s7153_s2 + $0x3c] sm:$0xf] }
 0x21a   :  { %v2868_v38 = vmul.f32 %v6018_v17, %v6606_v52  ;;  %6027 = vrcp.f32 %v2765_v35  ;;  %v2768_v39 = vpop.xlane.xlu0 %2767  ;;  %5805 = vmatprep.mubr.msk.f32.mxu0 %vm6074_vm1, %v6073_v0  ;;  %5808 = vmatprep.subr.mxu1 %v6073_v0 }
 0x21b   :  { %6029 = vrcp.f32 %v2768_v39  ;;  %5801 = vmatmul.mubr.msk.f32.vlgmr.msra.gmra.mrb[34].mxu1 %vm2896_vm4, %v2867_v4  ;;  %5813 = vmatprep.subr.mxu0 %v6073_v0  ;;  %v95_v39 = vld [vmem:[%s7153_s2 + $0x44] sm:$0xf] }
 0x21c   :  { %v6020_v43 = vpop.eup %6019  ;;  %5806 = vmatmul.mubr.msk.f32.vlgmr.msra.gmra.mrb[36].mxu0 %vm2896_vm4, %v2868_v38  ;;  %5809 = vmatpush3.msk.msra.mxu1 %vm2900_vm3, %v83_v36 }
 0x21d   :  { %v6022_v52 = vpop.eup %6021  ;;  %v2869_v7 = vmul.f32 %v6020_v43, %v6614_v60  ;;  %v2771_v15 = vpop.xlane.xlu1 %2770  ;;  %5810 = vmatprep.mubr.msk.f32.mxu1 %vm6074_vm1, %v6073_v0  ;;  %5814 = vmatpush3.msk.msra.mxu0 %vm2900_vm3, %v84_v46  ;;  %v86_v60 = vld [vmem:[%s7153_s2 + $0x20] sm:$0xf] }
 0x21e   :  { %v2870_v22 = vmul.f32 %v6022_v52, %v6616_v1  ;;  %6031 = vrcp.f32 %v2771_v15  ;;  %v2774_v44 = vpop.xlane.xlu0 %2773  ;;  %5815 = vmatprep.mubr.msk.f32.mxu0 %vm6074_vm1, %v6073_v0  ;;  %5818 = vmatprep.subr.mxu1 %v6073_v0 }
 0x21f   :  { %6033 = vrcp.f32 %v2774_v44  ;;  %5811 = vmatmul.mubr.msk.f32.vlgmr.msra.gmra.mrb[36].mxu1 %vm2896_vm4, %v2869_v7  ;;  %5823 = vmatprep.subr.mxu0 %v6073_v0 }
 0x220   :  { %v6024_v31 = vpop.eup %6023  ;;  %5816 = vmatmul.mubr.msk.f32.vlgmr.msra.gmra.mrb[38].mxu0 %vm2896_vm4, %v2870_v22  ;;  %5819 = vmatpush3.msk.msra.mxu1 %vm2900_vm3, %v85_v19  ;;  %v97_v19 = vld [vmem:[%s7153_s2 + $0x4c] sm:$0xf] }
 0x221   :  { %v6026_v1 = vpop.eup %6025  ;;  %v2871_v12 = vmul.f32 %v6024_v31, %v6624_v13  ;;  %v2777_v20 = vpop.xlane.xlu1 %2776  ;;  %5820 = vmatprep.mubr.msk.f32.mxu1 %vm6074_vm1, %v6073_v0  ;;  %5824 = vmatpush3.msk.msra.mxu0 %vm2900_vm3, %v86_v60  ;;  %v88_v13 = vld [vmem:[%s7153_s2 + $0x28] sm:$0xf] }
 0x222   :  { %v2872_v50 = vmul.f32 %v6026_v1, %v6626_v18  ;;  %6035 = vrcp.f32 %v2777_v20  ;;  %v2780_v37 = vpop.xlane.xlu0 %2779  ;;  %5825 = vmatprep.mubr.msk.f32.mxu0 %vm6074_vm1, %v6073_v0  ;;  %5828 = vmatprep.subr.mxu1 %v6073_v0 }
 0x223   :  { %6037 = vrcp.f32 %v2780_v37  ;;  %5821 = vmatmul.mubr.msk.f32.vlgmr.msra.gmra.mrb[38].mxu1 %vm2896_vm4, %v2871_v12  ;;  %5833 = vmatprep.subr.mxu0 %v6073_v0  ;;  %v99_v12 = vld [vmem:[%s7153_s2 + $0x54] sm:$0xf] }
 0x224   :  { %v6028_v45 = vpop.eup %6027  ;;  %5826 = vmatmul.mubr.msk.f32.vlgmr.msra.gmra.mrb[40].mxu0 %vm2896_vm4, %v2872_v50  ;;  %5829 = vmatpush3.msk.msra.mxu1 %vm2900_vm3, %v87_v33 }
 0x225   :  { %v6030_v18 = vpop.eup %6029  ;;  %v2873_v26 = vmul.f32 %v6028_v45, %v6634_v27  ;;  %v2783_v49 = vpop.xlane.xlu1 %2782  ;;  %5830 = vmatprep.mubr.msk.f32.mxu1 %vm6074_vm1, %v6073_v0  ;;  %5834 = vmatpush3.msk.msra.mxu0 %vm2900_vm3, %v88_v13  ;;  %v90_v27 = vld [vmem:[%s7153_s2 + $0x30] sm:$0xf]  ;;  %v101_v45 = vld [vmem:[%s7153_s2 + $0x5c] sm:$0xf] }
 0x226   :  { %v2874_v25 = vmul.f32 %v6030_v18, %v6636_v14  ;;  %6039 = vrcp.f32 %v2783_v49  ;;  %v2786_v51 = vpop.xlane.xlu0 %2785  ;;  %5835 = vmatprep.mubr.msk.f32.mxu0 %vm6074_vm1, %v6073_v0  ;;  %5838 = vmatprep.subr.mxu1 %v6073_v0 }
 0x227   :  { %6041 = vrcp.f32 %v2786_v51  ;;  %5831 = vmatmul.mubr.msk.f32.vlgmr.msra.gmra.mrb[40].mxu1 %vm2896_vm4, %v2873_v26  ;;  %5843 = vmatprep.subr.mxu0 %v6073_v0  ;;  %v103_v51 = vld [vmem:[%s7153_s2 + $0x64] sm:$0xf] }
 0x228   :  { %v6032_v56 = vpop.eup %6031  ;;  %5836 = vmatmul.mubr.msk.f32.vlgmr.msra.gmra.mrb[42].mxu0 %vm2896_vm4, %v2874_v25  ;;  %5839 = vmatpush3.msk.msra.mxu1 %vm2900_vm3, %v89_v21 }
 0x229   :  { %v6034_v14 = vpop.eup %6033  ;;  %v2875_v54 = vmul.f32 %v6032_v56, %v6644_v40  ;;  %v2789_v29 = vpop.xlane.xlu1 %2788  ;;  %5840 = vmatprep.mubr.msk.f32.mxu1 %vm6074_vm1, %v6073_v0  ;;  %5844 = vmatpush3.msk.msra.mxu0 %vm2900_vm3, %v90_v27  ;;  %v92_v40 = vld [vmem:[%s7153_s2 + $0x38] sm:$0xf] }
 0x22a   :  { %v2876_v8 = vmul.f32 %v6034_v14, %v6646_v23  ;;  %6043 = vrcp.f32 %v2789_v29  ;;  %v2792_v61 = vpop.xlane.xlu0 %2791  ;;  %5845 = vmatprep.mubr.msk.f32.mxu0 %vm6074_vm1, %v6073_v0  ;;  %5848 = vmatprep.subr.mxu1 %v6073_v0 }
 0x22b   :  { %6045 = vrcp.f32 %v2792_v61  ;;  %5841 = vmatmul.mubr.msk.f32.vlgmr.msra.gmra.mrb[42].mxu1 %vm2896_vm4, %v2875_v54  ;;  %5853 = vmatprep.subr.mxu0 %v6073_v0 }
 0x22c   :  { %v6036_v30 = vpop.eup %6035  ;;  %5846 = vmatmul.mubr.msk.f32.vlgmr.msra.gmra.mrb[44].mxu0 %vm2896_vm4, %v2876_v8  ;;  %5849 = vmatpush3.msk.msra.mxu1 %vm2900_vm3, %v91_v32  ;;  %v105_v32 = vld [vmem:[%s7153_s2 + $0x6c] sm:$0xf] }
 0x22d   :  { %v6038_v23 = vpop.eup %6037  ;;  %v2877_v34 = vmul.f32 %v6036_v30, %v6654_v55  ;;  %v2795_v59 = vpop.xlane.xlu1 %2794  ;;  %5850 = vmatprep.mubr.msk.f32.mxu1 %vm6074_vm1, %v6073_v0  ;;  %5854 = vmatpush3.msk.msra.mxu0 %vm2900_vm3, %v92_v40  ;;  %v94_v55 = vld [vmem:[%s7153_s2 + $0x40] sm:$0xf]  ;;  %v107_v30 = vld [vmem:[%s7153_s2 + $0x74] sm:$0xf] }
 0x22e   :  { %v2878_v17 = vmul.f32 %v6038_v23, %v6659_v58  ;;  %6047 = vrcp.f32 %v2795_v59  ;;  %v2798_v4 = vpop.xlane.xlu0 %2797  ;;  %5855 = vmatprep.mubr.msk.f32.mxu0 %vm6074_vm1, %v6073_v0  ;;  %5858 = vmatprep.subr.mxu1 %v6073_v0 }
 0x22f   :  { %6049 = vrcp.f32 %v2798_v4  ;;  %5851 = vmatmul.mubr.msk.f32.vlgmr.msra.gmra.mrb[44].mxu1 %vm2896_vm4, %v2877_v34  ;;  %5863 = vmatprep.subr.mxu0 %v6073_v0 }
 0x230   :  { %v6040_v35 = vpop.eup %6039  ;;  %5856 = vmatmul.mubr.msk.f32.vlgmr.msra.gmra.mrb[46].mxu0 %vm2896_vm4, %v2878_v17  ;;  %5859 = vmatpush3.msk.msra.mxu1 %vm2900_vm3, %v93_v63  ;;  %v109_v63 = vld [vmem:[%s7153_s2 + $0x7c] sm:$0xf] }
 0x231   :  { %v6042_v58 = vpop.eup %6041  ;;  %v2879_v36 = vmul.f32 %v6040_v35, %v6669_v9  ;;  %v2801_v38 = vpop.xlane.xlu1 %2800  ;;  %5860 = vmatprep.mubr.msk.f32.mxu1 %vm6074_vm1, %v6073_v0  ;;  %5864 = vmatpush3.msk.msra.mxu0 %vm2900_vm3, %v94_v55  ;;  %v96_v9 = vld [vmem:[%s7153_s2 + $0x48] sm:$0xf] }
 0x232   :  { %v2880_v46 = vmul.f32 %v6042_v58, %v6674_v10  ;;  %6051 = vrcp.f32 %v2801_v38  ;;  %v2804_v43 = vpop.xlane.xlu0 %2803  ;;  %5865 = vmatprep.mubr.msk.f32.mxu0 %vm6074_vm1, %v6073_v0  ;;  %5868 = vmatprep.subr.mxu1 %v6073_v0 }
 0x233   :  { %6053 = vrcp.f32 %v2804_v43  ;;  %5861 = vmatmul.mubr.msk.f32.vlgmr.msra.gmra.mrb[46].mxu1 %vm2896_vm4, %v2879_v36  ;;  %5873 = vmatprep.subr.mxu0 %v6073_v0 }
 0x234   :  { %v6044_v52 = vpop.eup %6043  ;;  %5866 = vmatmul.mubr.msk.f32.vlgmr.msra.gmra.mrb[48].mxu0 %vm2896_vm4, %v2880_v46  ;;  %5869 = vmatpush3.msk.msra.mxu1 %vm2900_vm3, %v95_v39 }
 0x235   :  { %v6046_v10 = vpop.eup %6045  ;;  %v2881_v7 = vmul.f32 %v6044_v52, %v6684_v41  ;;  %v2807_v15 = vpop.xlane.xlu1 %2806  ;;  %5870 = vmatprep.mubr.msk.f32.mxu1 %vm6074_vm1, %v6073_v0  ;;  %5874 = vmatpush3.msk.msra.mxu0 %vm2900_vm3, %v96_v9  ;;  %v98_v41 = vld [vmem:[%s7153_s2 + $0x50] sm:$0xf] }
 0x236   :  { %v2882_v22 = vmul.f32 %v6046_v10, %v6686_v28  ;;  %6055 = vrcp.f32 %v2807_v15  ;;  %v2810_v44 = vpop.xlane.xlu0 %2809  ;;  %5875 = vmatprep.mubr.msk.f32.mxu0 %vm6074_vm1, %v6073_v0  ;;  %5878 = vmatprep.subr.mxu1 %v6073_v0 }
 0x237   :  { %6057 = vrcp.f32 %v2810_v44  ;;  %5871 = vmatmul.mubr.msk.f32.vlgmr.msra.gmra.mrb[48].mxu1 %vm2896_vm4, %v2881_v7  ;;  %5883 = vmatprep.subr.mxu0 %v6073_v0 }
 0x238   :  { %v6048_v60 = vpop.eup %6047  ;;  %5876 = vmatmul.mubr.msk.f32.vlgmr.msra.gmra.mrb[50].mxu0 %vm2896_vm4, %v2882_v22  ;;  %5879 = vmatpush3.msk.msra.mxu1 %vm2900_vm3, %v97_v19 }
 0x239   :  { %v6050_v28 = vpop.eup %6049  ;;  %v2883_v31 = vmul.f32 %v6048_v60, %v6694_v47  ;;  %v2813_v1 = vpop.xlane.xlu1 %2812  ;;  %5880 = vmatprep.mubr.msk.f32.mxu1 %vm6074_vm1, %v6073_v0  ;;  %5884 = vmatpush3.msk.msra.mxu0 %vm2900_vm3, %v98_v41  ;;  %v100_v47 = vld [vmem:[%s7153_s2 + $0x58] sm:$0xf] }
 0x23a   :  { %v2884_v20 = vmul.f32 %v6050_v28, %v6696_v42  ;;  %6059 = vrcp.f32 %v2813_v1  ;;  %v2816_v33 = vpop.xlane.xlu0 %2815  ;;  %5885 = vmatprep.mubr.msk.f32.mxu0 %vm6074_vm1, %v6073_v0  ;;  %5888 = vmatprep.subr.mxu1 %v6073_v0 }
 0x23b   :  { %6061 = vrcp.f32 %v2816_v33  ;;  %5881 = vmatmul.mubr.msk.f32.vlgmr.msra.gmra.mrb[50].mxu1 %vm2896_vm4, %v2883_v31  ;;  %5893 = vmatprep.subr.mxu0 %v6073_v0 }
 0x23c   :  { %v6052_v50 = vpop.eup %6051  ;;  %5886 = vmatmul.mubr.msk.f32.vlgmr.msra.gmra.mrb[52].mxu0 %vm2896_vm4, %v2884_v20  ;;  %5889 = vmatpush3.msk.msra.mxu1 %vm2900_vm3, %v99_v12 }
 0x23d   :  { %v6054_v42 = vpop.eup %6053  ;;  %v2885_v37 = vmul.f32 %v6052_v50, %v6704_v53  ;;  %v2819_v13 = vpop.xlane.xlu1 %2818  ;;  %5890 = vmatprep.mubr.msk.f32.mxu1 %vm6074_vm1, %v6073_v0  ;;  %5894 = vmatpush3.msk.msra.mxu0 %vm2900_vm3, %v100_v47  ;;  %v102_v53 = vld [vmem:[%s7153_s2 + $0x60] sm:$0xf] }
 0x23e   :  { %v2886_v18 = vmul.f32 %v6054_v42, %v6706_v57  ;;  %6063 = vrcp.f32 %v2819_v13  ;;  %v2822_v26 = vpop.xlane.xlu0 %2821  ;;  %5895 = vmatprep.mubr.msk.f32.mxu0 %vm6074_vm1, %v6073_v0  ;;  %5898 = vmatprep.subr.mxu1 %v6073_v0 }
 0x23f   :  { %6065 = vrcp.f32 %v2822_v26  ;;  %5891 = vmatmul.mubr.msk.f32.vlgmr.msra.gmra.mrb[52].mxu1 %vm2896_vm4, %v2885_v37  ;;  %5903 = vmatprep.subr.mxu0 %v6073_v0 }
 0x240   :  { %v6056_v49 = vpop.eup %6055  ;;  %5896 = vmatmul.mubr.msk.f32.vlgmr.msra.gmra.mrb[54].mxu0 %vm2896_vm4, %v2886_v18  ;;  %5899 = vmatpush3.msk.msra.mxu1 %vm2900_vm3, %v101_v45 }
 0x241   :  { %v6058_v57 = vpop.eup %6057  ;;  %v2887_v21 = vmul.f32 %v6056_v49, %v6714_v62  ;;  %v2825_v25 = vpop.xlane.xlu1 %2824  ;;  %5900 = vmatprep.mubr.msk.f32.mxu1 %vm6074_vm1, %v6073_v0  ;;  %5904 = vmatpush3.msk.msra.mxu0 %vm2900_vm3, %v102_v53  ;;  %v104_v62 = vld [vmem:[%s7153_s2 + $0x68] sm:$0xf] }
 0x242   :  { %v2888_v27 = vmul.f32 %v6058_v57, %v6716_v6  ;;  %6067 = vrcp.f32 %v2825_v25  ;;  %v2828_v56 = vpop.xlane.xlu0 %2827  ;;  %5905 = vmatprep.mubr.msk.f32.mxu0 %vm6074_vm1, %v6073_v0  ;;  %5908 = vmatprep.subr.mxu1 %v6073_v0 }
 0x243   :  { %6069 = vrcp.f32 %v2828_v56  ;;  %5901 = vmatmul.mubr.msk.f32.vlgmr.msra.gmra.mrb[54].mxu1 %vm2896_vm4, %v2887_v21  ;;  %5913 = vmatprep.subr.mxu0 %v6073_v0 }
 0x244   :  { %v6060_v14 = vpop.eup %6059  ;;  %5906 = vmatmul.mubr.msk.f32.vlgmr.msra.gmra.mrb[56].mxu0 %vm2896_vm4, %v2888_v27  ;;  %5909 = vmatpush3.msk.msra.mxu1 %vm2900_vm3, %v103_v51 }
 0x245   :  { %v6062_v6 = vpop.eup %6061  ;;  %v2889_v54 = vmul.f32 %v6060_v14, %v6723_v3  ;;  %v2831_v29 = vpop.xlane.xlu1 %2830  ;;  %5910 = vmatprep.mubr.msk.f32.mxu1 %vm6074_vm1, %v6073_v0  ;;  %5914 = vmatpush3.msk.msra.mxu0 %vm2900_vm3, %v104_v62  ;;  %v106_v3 = vld [vmem:[%s7153_s2 + $0x70] sm:$0xf] }
 0x246   :  { %v2890_v8 = vmul.f32 %v6062_v6, %v6725_v2  ;;  %6071 = vrcp.f32 %v2831_v29  ;;  %5915 = vmatprep.mubr.msk.f32.mxu0 %vm6074_vm1, %v6073_v0  ;;  %5918 = vmatprep.subr.mxu1 %v6073_v0 }
 0x247   :  { %5911 = vmatmul.mubr.msk.f32.vlgmr.msra.gmra.mrb[56].mxu1 %vm2896_vm4, %v2889_v54  ;;  %5923 = vmatprep.subr.mxu0 %v6073_v0 }
 0x248   :  { %v6064_v61 = vpop.eup %6063  ;;  %5916 = vmatmul.mubr.msk.f32.vlgmr.msra.gmra.mrb[58].mxu0 %vm2896_vm4, %v2890_v8  ;;  %5919 = vmatpush3.msk.msra.mxu1 %vm2900_vm3, %v105_v32 }
 0x249   :  { %v6066_v2 = vpop.eup %6065  ;;  %v2891_v40 = vmul.f32 %v6064_v61, %v6731_v48  ;;  %5920 = vmatprep.mubr.msk.f32.mxu1 %vm6074_vm1, %v6073_v0  ;;  %5924 = vmatpush3.msk.msra.mxu0 %vm2900_vm3, %v106_v3  ;;  %v108_v48 = vld [vmem:[%s7153_s2 + $0x78] sm:$0xf] }
 0x24a   :  { %v2892_v23 = vmul.f32 %v6066_v2, %v6733_v5  ;;  %5925 = vmatprep.mubr.msk.f32.mxu0 %vm6074_vm1, %v6073_v0  ;;  %5928 = vmatprep.subr.mxu1 %v6073_v0 }
 0x24b   :  { %5921 = vmatmul.mubr.msk.f32.vlgmr.msra.gmra.mrb[58].mxu1 %vm2896_vm4, %v2891_v40  ;;  %5933 = vmatprep.subr.mxu0 %v6073_v0 }
 0x24c   :  { %v6068_v34 = vpop.eup %6067  ;;  %5926 = vmatmul.mubr.msk.f32.vlgmr.msra.gmra.mrb[60].mxu0 %vm2896_vm4, %v2892_v23  ;;  %5929 = vmatpush3.msk.msra.mxu1 %vm2900_vm3, %v107_v30 }
 0x24d   :  { %v6070_v59 = vpop.eup %6069  ;;  %v2893_v5 = vmul.f32 %v6068_v34, %v6739_v24  ;;  %5930 = vmatprep.mubr.msk.f32.mxu1 %vm6074_vm1, %v6073_v0  ;;  %5934 = vmatpush3.msk.msra.mxu0 %vm2900_vm3, %v108_v48 }
 0x24e   :  { %v2894_v17 = vmul.f32 %v6070_v59, %v6741_v11  ;;  %5935 = vmatprep.mubr.msk.f32.mxu0 %vm6074_vm1, %v6073_v0  ;;  %5938 = vmatprep.subr.mxu1 %v6073_v0 }
 0x24f   :  { %5931 = vmatmul.mubr.msk.f32.vlgmr.msra.gmra.mrb[60].mxu1 %vm2896_vm4, %v2893_v5 }
 0x250   :  { %v6072_v4 = vpop.eup %6071  ;;  %5936 = vmatmul.mubr.msk.f32.vlgmr.msra.gmra.mrb[62].mxu0 %vm2896_vm4, %v2894_v17  ;;  %5939 = vmatpush3.msk.msra.mxu1 %vm2900_vm3, %v109_v63 }
 0x251   :  { %v2895_v24 = vmul.f32 %v6072_v4, %v6747_v16  ;;  %5940 = vmatprep.mubr.msk.f32.mxu1 %vm6074_vm1, %v6073_v0 }
 0x253   :  { %5941 = vmatmul.mubr.msk.f32.vlgmr.msra.gmra.mrb[62].mxu1 %vm2896_vm4, %v2895_v24 }
 0x2e6   :  { %v2970_v11 = vpop.f32.mrb[32].mxu0 }
 0x2e7   :  { %5331 = vst.msk [vmem:[%s7154_s3] sm:$0x1f] %vm5330_vm5, %v2970_v11  ;;  %v5787_v55 = vpop.f32.mrb[33].mxu0 }
 0x2ea   :  { %v3046_v35 = vpop.f32.mrb[32].mxu1 }
 0x2eb   :  { %5332 = vst.msk [vmem:[%s7154_s3 + $0x8] sm:$0x1f] %vm5330_vm5, %v3046_v35  ;;  %v3122_v16 = vpop.f32.mrb[34].mxu0  ;;  %v5792_v58 = vpop.f32.mrb[33].mxu1 }
 0x2ec   :  { %5333 = vst.msk [vmem:[%s7154_s3 + $0x10] sm:$0x1f] %vm5330_vm5, %v3122_v16  ;;  %v5797_v0 = vpop.f32.mrb[35].mxu0 }
 0x2ee   :  { %v3198_v36 = vpop.f32.mrb[34].mxu1 }
 0x2ef   :  { %5334 = vst.msk [vmem:[%s7154_s3 + $0x18] sm:$0x1f] %vm5330_vm5, %v3198_v36  ;;  %v3274_v38 = vpop.f32.mrb[36].mxu0  ;;  %v5802_v39 = vpop.f32.mrb[35].mxu1 }
 0x2f0   :  { %5335 = vst.msk [vmem:[%s7154_s3 + $0x20] sm:$0x1f] %vm5330_vm5, %v3274_v38  ;;  %v5807_v46 = vpop.f32.mrb[37].mxu0 }
 0x2f2   :  { %v3350_v43 = vpop.f32.mrb[36].mxu1 }
 0x2f3   :  { %5336 = vst.msk [vmem:[%s7154_s3 + $0x28] sm:$0x1f] %vm5330_vm5, %v3350_v43  ;;  %v3426_v9 = vpop.f32.mrb[38].mxu0  ;;  %v5812_v52 = vpop.f32.mrb[37].mxu1 }
 0x2f4   :  { %5337 = vst.msk [vmem:[%s7154_s3 + $0x30] sm:$0x1f] %vm5330_vm5, %v3426_v9  ;;  %v5817_v10 = vpop.f32.mrb[39].mxu0 }
 0x2f6   :  { %v3502_v7 = vpop.f32.mrb[38].mxu1 }
 0x2f7   :  { %5338 = vst.msk [vmem:[%s7154_s3 + $0x38] sm:$0x1f] %vm5330_vm5, %v3502_v7  ;;  %v3578_v15 = vpop.f32.mrb[40].mxu0  ;;  %v5822_v19 = vpop.f32.mrb[39].mxu1 }
 0x2f8   :  { %5339 = vst.msk [vmem:[%s7154_s3 + $0x40] sm:$0x1f] %vm5330_vm5, %v3578_v15  ;;  %v5827_v22 = vpop.f32.mrb[41].mxu0 }
 0x2fa   :  { %v3654_v44 = vpop.f32.mrb[40].mxu1 }
 0x2fb   :  { %5340 = vst.msk [vmem:[%s7154_s3 + $0x48] sm:$0x1f] %vm5330_vm5, %v3654_v44  ;;  %v3730_v41 = vpop.f32.mrb[42].mxu0  ;;  %v5832_v60 = vpop.f32.mrb[41].mxu1 }
 0x2fc   :  { %5341 = vst.msk [vmem:[%s7154_s3 + $0x50] sm:$0x1f] %vm5330_vm5, %v3730_v41  ;;  %v5837_v28 = vpop.f32.mrb[43].mxu0 }
 0x2fe   :  { %v3806_v31 = vpop.f32.mrb[42].mxu1 }
 0x2ff   :  { %5342 = vst.msk [vmem:[%s7154_s3 + $0x58] sm:$0x1f] %vm5330_vm5, %v3806_v31  ;;  %v3882_v1 = vpop.f32.mrb[44].mxu0  ;;  %v5842_v12 = vpop.f32.mrb[43].mxu1 }
 0x300   :  { %5343 = vst.msk [vmem:[%s7154_s3 + $0x60] sm:$0x1f] %vm5330_vm5, %v3882_v1  ;;  %v5847_v20 = vpop.f32.mrb[45].mxu0 }
 0x302   :  { %v3958_v33 = vpop.f32.mrb[44].mxu1 }
 0x303   :  { %5344 = vst.msk [vmem:[%s7154_s3 + $0x68] sm:$0x1f] %vm5330_vm5, %v3958_v33  ;;  %v4034_v47 = vpop.f32.mrb[46].mxu0  ;;  %v5852_v50 = vpop.f32.mrb[45].mxu1 }
 0x304   :  { %5345 = vst.msk [vmem:[%s7154_s3 + $0x70] sm:$0x1f] %vm5330_vm5, %v4034_v47  ;;  %v5857_v42 = vpop.f32.mrb[47].mxu0 }
 0x306   :  { %v4110_v37 = vpop.f32.mrb[46].mxu1 }
 0x307   :  { %5346 = vst.msk [vmem:[%s7154_s3 + $0x78] sm:$0x1f] %vm5330_vm5, %v4110_v37  ;;  %v4186_v13 = vpop.f32.mrb[48].mxu0  ;;  %v5862_v45 = vpop.f32.mrb[47].mxu1 }
 0x308   :  { %5347 = vst.msk [vmem:[%s7154_s3 + $0x80] sm:$0x1f] %vm5330_vm5, %v4186_v13  ;;  %v5867_v18 = vpop.f32.mrb[49].mxu0 }
 0x30a   :  { %v4262_v26 = vpop.f32.mrb[48].mxu1 }
 0x30b   :  { %5348 = vst.msk [vmem:[%s7154_s3 + $0x88] sm:$0x1f] %vm5330_vm5, %v4262_v26  ;;  %v4338_v53 = vpop.f32.mrb[50].mxu0  ;;  %v5872_v49 = vpop.f32.mrb[49].mxu1 }
 0x30c   :  { %5349 = vst.msk [vmem:[%s7154_s3 + $0x90] sm:$0x1f] %vm5330_vm5, %v4338_v53  ;;  %v5877_v57 = vpop.f32.mrb[51].mxu0 }
 0x30e   :  { %v4414_v21 = vpop.f32.mrb[50].mxu1 }
 0x30f   :  { %5350 = vst.msk [vmem:[%s7154_s3 + $0x98] sm:$0x1f] %vm5330_vm5, %v4414_v21  ;;  %v4490_v25 = vpop.f32.mrb[52].mxu0  ;;  %v5882_v51 = vpop.f32.mrb[51].mxu1 }
 0x310   :  { %5351 = vst.msk [vmem:[%s7154_s3 + $0xa0] sm:$0x1f] %vm5330_vm5, %v4490_v25  ;;  %v5887_v27 = vpop.f32.mrb[53].mxu0 }
 0x312   :  { %v4566_v56 = vpop.f32.mrb[52].mxu1 }
 0x313   :  { %5352 = vst.msk [vmem:[%s7154_s3 + $0xa8] sm:$0x1f] %vm5330_vm5, %v4566_v56  ;;  %v4642_v62 = vpop.f32.mrb[54].mxu0  ;;  %v5892_v14 = vpop.f32.mrb[53].mxu1 }
 0x314   :  { %5353 = vst.msk [vmem:[%s7154_s3 + $0xb0] sm:$0x1f] %vm5330_vm5, %v4642_v62  ;;  %v5897_v6 = vpop.f32.mrb[55].mxu0 }
 0x316   :  { %v4718_v54 = vpop.f32.mrb[54].mxu1 }
 0x317   :  { %5354 = vst.msk [vmem:[%s7154_s3 + $0xb8] sm:$0x1f] %vm5330_vm5, %v4718_v54  ;;  %v4794_v29 = vpop.f32.mrb[56].mxu0  ;;  %v5902_v32 = vpop.f32.mrb[55].mxu1 }
 0x318   :  { %5355 = vst.msk [vmem:[%s7154_s3 + $0xc0] sm:$0x1f] %vm5330_vm5, %v4794_v29  ;;  %v5907_v8 = vpop.f32.mrb[57].mxu0 }
 0x31a   :  { %v4870_v3 = vpop.f32.mrb[56].mxu1 }
 0x31b   :  { %5356 = vst.msk [vmem:[%s7154_s3 + $0xc8] sm:$0x1f] %vm5330_vm5, %v4870_v3  ;;  %v4946_v61 = vpop.f32.mrb[58].mxu0  ;;  %v5912_v2 = vpop.f32.mrb[57].mxu1 }
 0x31c   :  { %5357 = vst.msk [vmem:[%s7154_s3 + $0xd0] sm:$0x1f] %vm5330_vm5, %v4946_v61  ;;  %v5917_v40 = vpop.f32.mrb[59].mxu0 }
 0x31e   :  { %v5022_v30 = vpop.f32.mrb[58].mxu1 }
 0x31f   :  { %5358 = vst.msk [vmem:[%s7154_s3 + $0xd8] sm:$0x1f] %vm5330_vm5, %v5022_v30  ;;  %v5098_v23 = vpop.f32.mrb[60].mxu0  ;;  %v5922_v48 = vpop.f32.mrb[59].mxu1 }
 0x320   :  { %5359 = vst.msk [vmem:[%s7154_s3 + $0xe0] sm:$0x1f] %vm5330_vm5, %v5098_v23  ;;  %v5927_v34 = vpop.f32.mrb[61].mxu0 }
 0x322   :  { %v5174_v59 = vpop.f32.mrb[60].mxu1 }
 0x323   :  { %5360 = vst.msk [vmem:[%s7154_s3 + $0xe8] sm:$0x1f] %vm5330_vm5, %v5174_v59  ;;  %v5250_v5 = vpop.f32.mrb[62].mxu0  ;;  %v5932_v63 = vpop.f32.mrb[61].mxu1 }
 0x324   :  { %5361 = vst.msk [vmem:[%s7154_s3 + $0xf0] sm:$0x1f] %vm5330_vm5, %v5250_v5  ;;  %v5937_v17 = vpop.f32.mrb[63].mxu0 }
 0x326   :  { %v5326_v4 = vpop.f32.mrb[62].mxu1 }
 0x327   :  { %5362 = vst.msk [vmem:[%s7154_s3 + $0xf8] sm:$0x1f] %vm5330_vm5, %v5326_v4  ;;  %v5942_v24 = vpop.f32.mrb[63].mxu1 }

</bundles_post_ra>
